<compile_context>
chip_gen: v7x
topology: tpu7x:2x2x1
jax: 0.10.0
libtpu: 0.0.40
codegen_flags: <defaults>
</compile_context>

<pallas_src>
import jax
import jax.numpy as jnp
from jax import lax
from jax.experimental import pallas as pl
from jax.experimental.pallas import tpu as pltpu


def lstm_peptides_kernel(add_ref, hinit_ref, cinit_ref, wpack_ref, wfc_ref,
                         bfc_ref, logits_ref, hN_ref, cN_ref, h1_scr):
    """Whole sequence in one invocation (everything fits VMEM at these sizes).

    add_ref   : (T+1, Bp, 8H) f32  per-step additive gate terms, columns grouped
                per gate type [i0 i1 f0 f1 g0 g1 o0 o1]; layer-0 columns hold the
                folded (emb@Wih0 + b0) for step t, layer-1 columns hold b1.
                i/f/o columns are pre-scaled by 0.5 (tanh-only activation trick).
    hinit/cinit: (2, Bp, H) f32    initial states for the 2 LSTM layers
    wpack_ref : (2H, 8H)   bf16    packed recurrent weight [[Whh0,Wih1],[0,Whh1]]
                (same column grouping / 0.5 scaling as add_ref)
    wfc/bfc   : (H, Op) bf16, (1, Op) f32  padded FC weights
    logits_ref: (T*Bp, Op) f32     lane-dense; wrapper slices back to (B,T,O)
    hN/cN_ref : (2, Bp, H) f32     final states
    h1_scr    : (T*Bp, H)  f32     VMEM scratch staging layer-1 outputs
    """
    Tp1, Bp, G8 = add_ref.shape
    T = Tp1 - 1
    H = G8 // 8
    H2 = 2 * H

    wpack = wpack_ref[...]                                   # (2H, 8H) bf16

    def fused_step(add_t, h_pack, c_pack):
        # ONE MXU push produces layer-0(t) and layer-1(t-1) gate blocks.
        gates = jnp.dot(h_pack.astype(wpack.dtype), wpack,
                        preferred_element_type=jnp.float32) + add_t
        # ONE EUP pass over the whole (Bp, 8H) gate block; i/f/o preactivations
        # were pre-scaled by 0.5 so sigmoid(x) == 0.5*tanh(x/2)+0.5 (VPU FMA).
        th = jnp.tanh(gates)
        i = 0.5 * th[:, 0 * H2:1 * H2] + 0.5
        f = 0.5 * th[:, 1 * H2:2 * H2] + 0.5
        g = th[:, 2 * H2:3 * H2]
        o = 0.5 * th[:, 3 * H2:4 * H2] + 0.5
        c_new = f * c_pack + i * g                           # (Bp, 2H) f32
        h_new = o * jnp.tanh(c_new)                          # (Bp, 2H) f32
        return h_new, c_new

    h1_init = hinit_ref[1]
    c1_init = cinit_ref[1]

    # Prologue (wavefront t=0): only the layer-0 half is valid; restore layer-1.
    h_pack = jnp.concatenate([hinit_ref[0], h1_init], axis=-1)
    c_pack = jnp.concatenate([cinit_ref[0], c1_init], axis=-1)
    h_new, c_new = fused_step(add_ref[0], h_pack, c_pack)
    h_pack = jnp.concatenate([h_new[:, :H], h1_init], axis=-1)
    c_pack = jnp.concatenate([c_new[:, :H], c1_init], axis=-1)

    # Steady state, fully unrolled with static indices (T is tiny): iteration t
    # advances layer-0 to step t and layer-1 to step t-1.
    for t in range(1, T):
        h_new, c_new = fused_step(add_ref[t], h_pack, c_pack)
        h1_scr[(t - 1) * Bp:t * Bp, :] = h_new[:, H:]        # stage h1(t-1)
        h_pack, c_pack = h_new, c_new

    # Tail (wavefront t=T): only the layer-1 half (step T-1) is valid.
    h_tail, c_tail = fused_step(add_ref[T], h_pack, c_pack)
    h1_scr[(T - 1) * Bp:T * Bp, :] = h_tail[:, H:]

    hN_ref[0] = h_pack[:, :H]                                # h0(T-1)
    hN_ref[1] = h_tail[:, H:]                                # h1(T-1)
    cN_ref[0] = c_pack[:, :H]
    cN_ref[1] = c_tail[:, H:]

    # dropout_layer: eval-mode identity.
    # TODO(synk): training-mode dropout mask/scaling not implemented.
    # Deferred FC: one MXU matmul and one lane-dense (T*Bp, 128) unmasked store.
    h_all = h1_scr[...].astype(wfc_ref.dtype)
    logits_ref[...] = (jnp.dot(h_all, wfc_ref[...],
                               preferred_element_type=jnp.float32)
                       + bfc_ref[...])


def lstm_peptides_forward(x, prev_state, params, matmul_dtype=jnp.bfloat16):
    """Mirrors LSTMPeptides.forward(x, prev_state) -> (logits, (h, c))."""
    h0, c0 = prev_state                                      # (layers=2, B, H)
    B, T = x.shape
    H = h0.shape[-1]
    O = params["w_fc"].shape[0]

    Bp = ((B + 7) // 8) * 8                                  # sublane-full batch
    Op = ((O + 127) // 128) * 128                            # lane-dense outputs

    # sigmoid(x) = 0.5*tanh(x/2)+0.5: pre-scale every i/f/o preactivation
    # contribution by 0.5 so the kernel needs one tanh pass per gate block.
    gate_scale = jnp.concatenate(
        [jnp.full((H,), 0.5), jnp.full((H,), 0.5),
         jnp.ones((H,)), jnp.full((H,), 0.5)]).astype(jnp.float32)

    def interleave_gates(a, b):
        # a, b: (..., 4H) in [i,f,g,o] order -> (..., 8H) grouped per gate type:
        # [i_a i_b f_a f_b g_a g_b o_a o_b]
        blocks = []
        for k in range(4):
            blocks.append(a[..., k * H:(k + 1) * H])
            blocks.append(b[..., k * H:(k + 1) * H])
        return jnp.concatenate(blocks, axis=-1)

    # Layer-0: fold embedding + input projection + biases into one (V, 4H) table.
    folded0 = (params["embedding"] @ params["w_ih_l0"].T
               + params["b_ih_l0"] + params["b_hh_l0"]) * gate_scale     # (V, 4H)
    g0 = jnp.take(folded0, x, axis=0)                        # (B, T, 4H) gather
    g0_tm = jnp.transpose(g0, (1, 0, 2))                     # (T, B, 4H)
    g0_tm = jnp.pad(g0_tm, ((0, 1), (0, Bp - B), (0, 0)))    # +1 tail slot, pad B

    b1 = (params["b_ih_l1"] + params["b_hh_l1"]) * gate_scale            # (4H,)
    add_tab = interleave_gates(g0_tm, jnp.broadcast_to(b1, g0_tm.shape))  # (T+1,Bp,8H)

    # Packed recurrent weight (2H, 8H): rows [0,H) act on h0(t-1), rows [H,2H)
    # on h1(t-2); layer-0 / layer-1 gate columns interleaved per gate type.
    whh0_s = params["w_hh_l0"].T * gate_scale                # (H, 4H)
    wih1_s = params["w_ih_l1"].T * gate_scale
    whh1_s = params["w_hh_l1"].T * gate_scale
    top = interleave_gates(whh0_s, wih1_s)                   # (H, 8H)
    bot = interleave_gates(jnp.zeros_like(whh0_s), whh1_s)   # (H, 8H)
    w_pack = jnp.concatenate([top, bot], axis=0).astype(matmul_dtype)    # (2H, 8H)

    hinit = jnp.pad(h0, ((0, 0), (0, Bp - B), (0, 0)))
    cinit = jnp.pad(c0, ((0, 0), (0, Bp - B), (0, 0)))

    wfc = jnp.pad(params["w_fc"].T,
                  ((0, 0), (0, Op - O))).astype(matmul_dtype)            # (H, Op)
    bfc = jnp.pad(params["b_fc"], (0, Op - O))[None, :]                  # (1, Op)

    inputs = (add_tab, hinit, cinit, w_pack, wfc, bfc)
    vmem = pl.BlockSpec(memory_space=pltpu.MemorySpace.VMEM)

    flops = (2 * (T + 1) * Bp * (2 * H) * (8 * H)            # packed recurrent
             + 2 * T * Bp * H * Op)                          # deferred FC
    transcendentals = (T + 1) * Bp * (8 * H + 2 * H)
    bytes_accessed = (sum(int(a.size) * a.dtype.itemsize for a in inputs)
                      + 4 * (T * Bp * Op + 4 * Bp * H))

    # Note: at large B/T, add a batch-chunk grid (dimension_semantics=("parallel",))
    # to use both v7x TensorCores, and chunk T with real BlockSpecs on add_tab /
    # logits so resident buffers respect v7x's smaller VMEM; at these toy sizes
    # everything fits on all generations.
    logits_flat, hN_p, cN_p = pl.pallas_call(
        lstm_peptides_kernel,
        out_shape=(jax.ShapeDtypeStruct((T * Bp, Op), jnp.float32),
                   jax.ShapeDtypeStruct((2, Bp, H), jnp.float32),
                   jax.ShapeDtypeStruct((2, Bp, H), jnp.float32)),
        in_specs=[vmem] * len(inputs),
        out_specs=(vmem, vmem, vmem),
        scratch_shapes=[pltpu.VMEM((T * Bp, H), jnp.float32)],
        compiler_params=pltpu.CompilerParams(vmem_limit_bytes=32 * 1024 * 1024),
        cost_estimate=pl.CostEstimate(flops=flops,
                                      transcendentals=transcendentals,
                                      bytes_accessed=bytes_accessed),
    )(*inputs)

    logits = logits_flat.reshape(T, Bp, Op)[:, :B, :O]
    logits = jnp.transpose(logits, (1, 0, 2))                # (B, T, O) batch_first
    return logits, (hN_p[:, :B], cN_p[:, :B])


def lstm_peptides_reference(x, prev_state, params):
    """Pure-JAX f32 reference (same math as the PyTorch module)."""
    h0, c0 = prev_state
    H = h0.shape[-1]
    emb = jnp.take(params["embedding"], x, axis=0)           # (B, T, E)

    def cell(xt, h, c, wih, whh, bih, bhh):
        g = xt @ wih.T + bih + h @ whh.T + bhh
        i = jax.nn.sigmoid(g[:, 0 * H:1 * H])
        f = jax.nn.sigmoid(g[:, 1 * H:2 * H])
        gg = jnp.tanh(g[:, 2 * H:3 * H])
        o = jax.nn.sigmoid(g[:, 3 * H:4 * H])
        c = f * c + i * gg
        h = o * jnp.tanh(c)
        return h, c

    def step(carry, xt):
        h0_, c0_, h1_, c1_ = carry
        h0_, c0_ = cell(xt, h0_, c0_, params["w_ih_l0"], params["w_hh_l0"],
                        params["b_ih_l0"], params["b_hh_l0"])
        h1_, c1_ = cell(h0_, h1_, c1_, params["w_ih_l1"], params["w_hh_l1"],
                        params["b_ih_l1"], params["b_hh_l1"])
        logit = h1_ @ params["w_fc"].T + params["b_fc"]
        return (h0_, c0_, h1_, c1_), logit

    carry, logits_tm = lax.scan(step, (h0[0], c0[0], h0[1], c0[1]),
                                jnp.transpose(emb, (1, 0, 2)))
    hN = jnp.stack([carry[0], carry[2]])
    cN = jnp.stack([carry[1], carry[3]])
    return jnp.transpose(logits_tm, (1, 0, 2)), (hN, cN)


def init_params(key, vocab=22, emb_dim=128, hidden=32, out=22):
    ks = jax.random.split(key, 12)
    u = lambda k, shape, s: jax.random.uniform(k, shape, jnp.float32, -s, s)
    kfac = 1.0 / jnp.sqrt(hidden)
    params = {
        "embedding": u(ks[0], (vocab, emb_dim), 1.0).at[21].set(0.0),  # padding_idx=21
        "w_ih_l0": u(ks[1], (4 * hidden, emb_dim), kfac),
        "w_hh_l0": u(ks[2], (4 * hidden, hidden), kfac),
        "b_ih_l0": u(ks[3], (4 * hidden,), kfac),
        "b_hh_l0": u(ks[4], (4 * hidden,), kfac),
        "w_ih_l1": u(ks[5], (4 * hidden, hidden), kfac),
        "w_hh_l1": u(ks[6], (4 * hidden, hidden), kfac),
        "b_ih_l1": u(ks[7], (4 * hidden,), kfac),
        "b_hh_l1": u(ks[8], (4 * hidden,), kfac),
        "w_fc": u(ks[9], (out, hidden), kfac),
        "b_fc": u(ks[10], (out,), kfac),
    }
    return params


if __name__ == "__main__":
    VOCAB, EMB_DIM = 22, 128          # fixed by the module (len_vocab, embedding_dim)
    HIDDEN, LAYERS, OUT = 32, 2, 22   # small hidden_size; layers=2, output_size=22
    B, T = 2, 8

    key = jax.random.PRNGKey(0)
    k_params, k_x = jax.random.split(key)
    params = init_params(k_params, VOCAB, EMB_DIM, HIDDEN, OUT)

    x = jax.random.randint(k_x, (B, T), 0, VOCAB, dtype=jnp.int32)
    # init_state(batch_size): zeros (layers, B, hidden)
    h0 = jnp.zeros((LAYERS, B, HIDDEN), jnp.float32)
    c0 = jnp.zeros((LAYERS, B, HIDDEN), jnp.float32)

    logits, (hN, cN) = lstm_peptides_forward(x, (h0, c0), params)
    jax.block_until_ready((logits, hN, cN))

    logits_ref, (hN_ref, cN_ref) = lstm_peptides_reference(x, (h0, c0), params)
    assert logits.shape == (B, T, OUT)
    assert hN.shape == (LAYERS, B, HIDDEN) and cN.shape == (LAYERS, B, HIDDEN)
    # Tolerance relaxed vs pure-f32: kernel uses bf16 MXU operands (f32 accumulate).
    assert jnp.allclose(logits, logits_ref, atol=2e-2, rtol=2e-2)
    assert jnp.allclose(hN, hN_ref, atol=2e-2, rtol=2e-2)
    assert jnp.allclose(cN, cN_ref, atol=2e-2, rtol=2e-2)

    print("KERNEL_OK")
</pallas_src>

<mosaic_0001>
module attributes {stable_mosaic.version = 11 : i64} {
  func.func @lstm_peptides_kernel(%arg0: memref<9x8x256xf32, #tpu.memory_space<vmem>>, %arg1: memref<2x8x32xf32, #tpu.memory_space<vmem>>, %arg2: memref<2x8x32xf32, #tpu.memory_space<vmem>>, %arg3: memref<64x256xbf16, #tpu.memory_space<vmem>>, %arg4: memref<32x128xbf16, #tpu.memory_space<vmem>>, %arg5: memref<1x128xf32, #tpu.memory_space<vmem>>, %arg6: memref<64x128xf32, #tpu.memory_space<vmem>>, %arg7: memref<2x8x32xf32, #tpu.memory_space<vmem>>, %arg8: memref<2x8x32xf32, #tpu.memory_space<vmem>>, %arg9: memref<64x32xf32, #tpu.memory_space<vmem>>) attributes {dimension_semantics = [], scalar_prefetch = 0 : i64, scratch_operands = 1 : i64, tpu.core_type = #tpu.core_type<tc>} {
    %c0 = arith.constant 0 : index
    %c0_0 = arith.constant 0 : index
    %0 = vector.load %arg3[%c0, %c0_0] : memref<64x256xbf16, #tpu.memory_space<vmem>>, vector<64x256xbf16>
    %c1 = arith.constant 1 : index
    %c0_1 = arith.constant 0 : index
    %c0_2 = arith.constant 0 : index
    %1 = vector.load %arg1[%c1, %c0_1, %c0_2] : memref<2x8x32xf32, #tpu.memory_space<vmem>>, vector<1x8x32xf32>
    %2 = vector.shape_cast %1 : vector<1x8x32xf32> to vector<8x32xf32>
    %c1_3 = arith.constant 1 : index
    %c0_4 = arith.constant 0 : index
    %c0_5 = arith.constant 0 : index
    %3 = vector.load %arg2[%c1_3, %c0_4, %c0_5] : memref<2x8x32xf32, #tpu.memory_space<vmem>>, vector<1x8x32xf32>
    %4 = vector.shape_cast %3 : vector<1x8x32xf32> to vector<8x32xf32>
    %c0_6 = arith.constant 0 : index
    %c0_7 = arith.constant 0 : index
    %c0_8 = arith.constant 0 : index
    %5 = vector.load %arg1[%c0_6, %c0_7, %c0_8] : memref<2x8x32xf32, #tpu.memory_space<vmem>>, vector<1x8x32xf32>
    %6 = vector.shape_cast %5 : vector<1x8x32xf32> to vector<8x32xf32>
    %7 = tpu.concatenate %6, %2 in 1 : vector<8x32xf32>, vector<8x32xf32> -> vector<8x64xf32>
    %c0_9 = arith.constant 0 : index
    %c0_10 = arith.constant 0 : index
    %c0_11 = arith.constant 0 : index
    %8 = vector.load %arg2[%c0_9, %c0_10, %c0_11] : memref<2x8x32xf32, #tpu.memory_space<vmem>>, vector<1x8x32xf32>
    %9 = vector.shape_cast %8 : vector<1x8x32xf32> to vector<8x32xf32>
    %10 = tpu.concatenate %9, %4 in 1 : vector<8x32xf32>, vector<8x32xf32> -> vector<8x64xf32>
    %c0_12 = arith.constant 0 : index
    %c0_13 = arith.constant 0 : index
    %c0_14 = arith.constant 0 : index
    %11 = vector.load %arg0[%c0_12, %c0_13, %c0_14] : memref<9x8x256xf32, #tpu.memory_space<vmem>>, vector<1x8x256xf32>
    %12 = vector.shape_cast %11 : vector<1x8x256xf32> to vector<8x256xf32>
    %13 = arith.truncf %7 : vector<8x64xf32> to vector<8x64xbf16>
    %cst = arith.constant dense<0.000000e+00> : vector<8x256xf32>
    %14 = tpu.matmul %13, %0, %cst {dimension_numbers = #tpu.dot_dimension_numbers<[1], [0], [0], [1], [0, 0, 1, 1], [], []>} : vector<8x64xbf16>, vector<64x256xbf16>, vector<8x256xf32> -> vector<8x256xf32>
    %15 = arith.addf %14, %12 : vector<8x256xf32>
    %16 = math.tanh %15 : vector<8x256xf32>
    %17 = vector.extract_strided_slice %16 {offsets = [0, 0], sizes = [8, 64], strides = [1, 1]} : vector<8x256xf32> to vector<8x64xf32>
    %cst_15 = arith.constant 5.000000e-01 : f32
    %18 = vector.broadcast %cst_15 : f32 to vector<8x64xf32>
    %19 = arith.mulf %18, %17 : vector<8x64xf32>
    %cst_16 = arith.constant 5.000000e-01 : f32
    %20 = vector.broadcast %cst_16 : f32 to vector<8x64xf32>
    %21 = arith.addf %19, %20 : vector<8x64xf32>
    %22 = vector.extract_strided_slice %16 {offsets = [0, 64], sizes = [8, 64], strides = [1, 1]} : vector<8x256xf32> to vector<8x64xf32>
    %cst_17 = arith.constant 5.000000e-01 : f32
    %23 = vector.broadcast %cst_17 : f32 to vector<8x64xf32>
    %24 = arith.mulf %23, %22 : vector<8x64xf32>
    %cst_18 = arith.constant 5.000000e-01 : f32
    %25 = vector.broadcast %cst_18 : f32 to vector<8x64xf32>
    %26 = arith.addf %24, %25 : vector<8x64xf32>
    %27 = vector.extract_strided_slice %16 {offsets = [0, 128], sizes = [8, 64], strides = [1, 1]} : vector<8x256xf32> to vector<8x64xf32>
    %28 = vector.extract_strided_slice %16 {offsets = [0, 192], sizes = [8, 64], strides = [1, 1]} : vector<8x256xf32> to vector<8x64xf32>
    %cst_19 = arith.constant 5.000000e-01 : f32
    %29 = vector.broadcast %cst_19 : f32 to vector<8x64xf32>
    %30 = arith.mulf %29, %28 : vector<8x64xf32>
    %cst_20 = arith.constant 5.000000e-01 : f32
    %31 = vector.broadcast %cst_20 : f32 to vector<8x64xf32>
    %32 = arith.addf %30, %31 : vector<8x64xf32>
    %33 = arith.mulf %26, %10 : vector<8x64xf32>
    %34 = arith.mulf %21, %27 : vector<8x64xf32>
    %35 = arith.addf %33, %34 : vector<8x64xf32>
    %36 = math.tanh %35 : vector<8x64xf32>
    %37 = arith.mulf %32, %36 : vector<8x64xf32>
    %38 = vector.extract_strided_slice %37 {offsets = [0, 0], sizes = [8, 32], strides = [1, 1]} : vector<8x64xf32> to vector<8x32xf32>
    %39 = tpu.concatenate %38, %2 in 1 : vector<8x32xf32>, vector<8x32xf32> -> vector<8x64xf32>
    %40 = vector.extract_strided_slice %35 {offsets = [0, 0], sizes = [8, 32], strides = [1, 1]} : vector<8x64xf32> to vector<8x32xf32>
    %41 = tpu.concatenate %40, %4 in 1 : vector<8x32xf32>, vector<8x32xf32> -> vector<8x64xf32>
    %c1_21 = arith.constant 1 : index
    %c0_22 = arith.constant 0 : index
    %c0_23 = arith.constant 0 : index
    %42 = vector.load %arg0[%c1_21, %c0_22, %c0_23] : memref<9x8x256xf32, #tpu.memory_space<vmem>>, vector<1x8x256xf32>
    %43 = vector.shape_cast %42 : vector<1x8x256xf32> to vector<8x256xf32>
    %44 = arith.truncf %39 : vector<8x64xf32> to vector<8x64xbf16>
    %cst_24 = arith.constant dense<0.000000e+00> : vector<8x256xf32>
    %45 = tpu.matmul %44, %0, %cst_24 {dimension_numbers = #tpu.dot_dimension_numbers<[1], [0], [0], [1], [0, 0, 1, 1], [], []>} : vector<8x64xbf16>, vector<64x256xbf16>, vector<8x256xf32> -> vector<8x256xf32>
    %46 = arith.addf %45, %43 : vector<8x256xf32>
    %47 = math.tanh %46 : vector<8x256xf32>
    %48 = vector.extract_strided_slice %47 {offsets = [0, 0], sizes = [8, 64], strides = [1, 1]} : vector<8x256xf32> to vector<8x64xf32>
    %cst_25 = arith.constant 5.000000e-01 : f32
    %49 = vector.broadcast %cst_25 : f32 to vector<8x64xf32>
    %50 = arith.mulf %49, %48 : vector<8x64xf32>
    %cst_26 = arith.constant 5.000000e-01 : f32
    %51 = vector.broadcast %cst_26 : f32 to vector<8x64xf32>
    %52 = arith.addf %50, %51 : vector<8x64xf32>
    %53 = vector.extract_strided_slice %47 {offsets = [0, 64], sizes = [8, 64], strides = [1, 1]} : vector<8x256xf32> to vector<8x64xf32>
    %cst_27 = arith.constant 5.000000e-01 : f32
    %54 = vector.broadcast %cst_27 : f32 to vector<8x64xf32>
    %55 = arith.mulf %54, %53 : vector<8x64xf32>
    %cst_28 = arith.constant 5.000000e-01 : f32
    %56 = vector.broadcast %cst_28 : f32 to vector<8x64xf32>
    %57 = arith.addf %55, %56 : vector<8x64xf32>
    %58 = vector.extract_strided_slice %47 {offsets = [0, 128], sizes = [8, 64], strides = [1, 1]} : vector<8x256xf32> to vector<8x64xf32>
    %59 = vector.extract_strided_slice %47 {offsets = [0, 192], sizes = [8, 64], strides = [1, 1]} : vector<8x256xf32> to vector<8x64xf32>
    %cst_29 = arith.constant 5.000000e-01 : f32
    %60 = vector.broadcast %cst_29 : f32 to vector<8x64xf32>
    %61 = arith.mulf %60, %59 : vector<8x64xf32>
    %cst_30 = arith.constant 5.000000e-01 : f32
    %62 = vector.broadcast %cst_30 : f32 to vector<8x64xf32>
    %63 = arith.addf %61, %62 : vector<8x64xf32>
    %64 = arith.mulf %57, %41 : vector<8x64xf32>
    %65 = arith.mulf %52, %58 : vector<8x64xf32>
    %66 = arith.addf %64, %65 : vector<8x64xf32>
    %67 = math.tanh %66 : vector<8x64xf32>
    %68 = arith.mulf %63, %67 : vector<8x64xf32>
    %69 = vector.extract_strided_slice %68 {offsets = [0, 32], sizes = [8, 32], strides = [1, 1]} : vector<8x64xf32> to vector<8x32xf32>
    %c0_31 = arith.constant 0 : index
    %c0_32 = arith.constant 0 : index
    %70 = vector.load %arg9[%c0_31, %c0_32] : memref<64x32xf32, #tpu.memory_space<vmem>>, vector<8x32xf32>
    tpu.vector_store %arg9[%c0_31, %c0_32], %69 {strides = array<i32>} : memref<64x32xf32, #tpu.memory_space<vmem>>, vector<8x32xf32>,
    %c2 = arith.constant 2 : index
    %c0_33 = arith.constant 0 : index
    %c0_34 = arith.constant 0 : index
    %71 = vector.load %arg0[%c2, %c0_33, %c0_34] : memref<9x8x256xf32, #tpu.memory_space<vmem>>, vector<1x8x256xf32>
    %72 = vector.shape_cast %71 : vector<1x8x256xf32> to vector<8x256xf32>
    %73 = arith.truncf %68 : vector<8x64xf32> to vector<8x64xbf16>
    %cst_35 = arith.constant dense<0.000000e+00> : vector<8x256xf32>
    %74 = tpu.matmul %73, %0, %cst_35 {dimension_numbers = #tpu.dot_dimension_numbers<[1], [0], [0], [1], [0, 0, 1, 1], [], []>} : vector<8x64xbf16>, vector<64x256xbf16>, vector<8x256xf32> -> vector<8x256xf32>
    %75 = arith.addf %74, %72 : vector<8x256xf32>
    %76 = math.tanh %75 : vector<8x256xf32>
    %77 = vector.extract_strided_slice %76 {offsets = [0, 0], sizes = [8, 64], strides = [1, 1]} : vector<8x256xf32> to vector<8x64xf32>
    %cst_36 = arith.constant 5.000000e-01 : f32
    %78 = vector.broadcast %cst_36 : f32 to vector<8x64xf32>
    %79 = arith.mulf %78, %77 : vector<8x64xf32>
    %cst_37 = arith.constant 5.000000e-01 : f32
    %80 = vector.broadcast %cst_37 : f32 to vector<8x64xf32>
    %81 = arith.addf %79, %80 : vector<8x64xf32>
    %82 = vector.extract_strided_slice %76 {offsets = [0, 64], sizes = [8, 64], strides = [1, 1]} : vector<8x256xf32> to vector<8x64xf32>
    %cst_38 = arith.constant 5.000000e-01 : f32
    %83 = vector.broadcast %cst_38 : f32 to vector<8x64xf32>
    %84 = arith.mulf %83, %82 : vector<8x64xf32>
    %cst_39 = arith.constant 5.000000e-01 : f32
    %85 = vector.broadcast %cst_39 : f32 to vector<8x64xf32>
    %86 = arith.addf %84, %85 : vector<8x64xf32>
    %87 = vector.extract_strided_slice %76 {offsets = [0, 128], sizes = [8, 64], strides = [1, 1]} : vector<8x256xf32> to vector<8x64xf32>
    %88 = vector.extract_strided_slice %76 {offsets = [0, 192], sizes = [8, 64], strides = [1, 1]} : vector<8x256xf32> to vector<8x64xf32>
    %cst_40 = arith.constant 5.000000e-01 : f32
    %89 = vector.broadcast %cst_40 : f32 to vector<8x64xf32>
    %90 = arith.mulf %89, %88 : vector<8x64xf32>
    %cst_41 = arith.constant 5.000000e-01 : f32
    %91 = vector.broadcast %cst_41 : f32 to vector<8x64xf32>
    %92 = arith.addf %90, %91 : vector<8x64xf32>
    %93 = arith.mulf %86, %66 : vector<8x64xf32>
    %94 = arith.mulf %81, %87 : vector<8x64xf32>
    %95 = arith.addf %93, %94 : vector<8x64xf32>
    %96 = math.tanh %95 : vector<8x64xf32>
    %97 = arith.mulf %92, %96 : vector<8x64xf32>
    %98 = vector.extract_strided_slice %97 {offsets = [0, 32], sizes = [8, 32], strides = [1, 1]} : vector<8x64xf32> to vector<8x32xf32>
    %c8 = arith.constant 8 : index
    %c0_42 = arith.constant 0 : index
    %99 = vector.load %arg9[%c8, %c0_42] : memref<64x32xf32, #tpu.memory_space<vmem>>, vector<8x32xf32>
    tpu.vector_store %arg9[%c8, %c0_42], %98 {strides = array<i32>} : memref<64x32xf32, #tpu.memory_space<vmem>>, vector<8x32xf32>,
    %c3 = arith.constant 3 : index
    %c0_43 = arith.constant 0 : index
    %c0_44 = arith.constant 0 : index
    %100 = vector.load %arg0[%c3, %c0_43, %c0_44] : memref<9x8x256xf32, #tpu.memory_space<vmem>>, vector<1x8x256xf32>
    %101 = vector.shape_cast %100 : vector<1x8x256xf32> to vector<8x256xf32>
    %102 = arith.truncf %97 : vector<8x64xf32> to vector<8x64xbf16>
    %cst_45 = arith.constant dense<0.000000e+00> : vector<8x256xf32>
    %103 = tpu.matmul %102, %0, %cst_45 {dimension_numbers = #tpu.dot_dimension_numbers<[1], [0], [0], [1], [0, 0, 1, 1], [], []>} : vector<8x64xbf16>, vector<64x256xbf16>, vector<8x256xf32> -> vector<8x256xf32>
    %104 = arith.addf %103, %101 : vector<8x256xf32>
    %105 = math.tanh %104 : vector<8x256xf32>
    %106 = vector.extract_strided_slice %105 {offsets = [0, 0], sizes = [8, 64], strides = [1, 1]} : vector<8x256xf32> to vector<8x64xf32>
    %cst_46 = arith.constant 5.000000e-01 : f32
    %107 = vector.broadcast %cst_46 : f32 to vector<8x64xf32>
    %108 = arith.mulf %107, %106 : vector<8x64xf32>
    %cst_47 = arith.constant 5.000000e-01 : f32
    %109 = vector.broadcast %cst_47 : f32 to vector<8x64xf32>
    %110 = arith.addf %108, %109 : vector<8x64xf32>
    %111 = vector.extract_strided_slice %105 {offsets = [0, 64], sizes = [8, 64], strides = [1, 1]} : vector<8x256xf32> to vector<8x64xf32>
    %cst_48 = arith.constant 5.000000e-01 : f32
    %112 = vector.broadcast %cst_48 : f32 to vector<8x64xf32>
    %113 = arith.mulf %112, %111 : vector<8x64xf32>
    %cst_49 = arith.constant 5.000000e-01 : f32
    %114 = vector.broadcast %cst_49 : f32 to vector<8x64xf32>
    %115 = arith.addf %113, %114 : vector<8x64xf32>
    %116 = vector.extract_strided_slice %105 {offsets = [0, 128], sizes = [8, 64], strides = [1, 1]} : vector<8x256xf32> to vector<8x64xf32>
    %117 = vector.extract_strided_slice %105 {offsets = [0, 192], sizes = [8, 64], strides = [1, 1]} : vector<8x256xf32> to vector<8x64xf32>
    %cst_50 = arith.constant 5.000000e-01 : f32
    %118 = vector.broadcast %cst_50 : f32 to vector<8x64xf32>
    %119 = arith.mulf %118, %117 : vector<8x64xf32>
    %cst_51 = arith.constant 5.000000e-01 : f32
    %120 = vector.broadcast %cst_51 : f32 to vector<8x64xf32>
    %121 = arith.addf %119, %120 : vector<8x64xf32>
    %122 = arith.mulf %115, %95 : vector<8x64xf32>
    %123 = arith.mulf %110, %116 : vector<8x64xf32>
    %124 = arith.addf %122, %123 : vector<8x64xf32>
    %125 = math.tanh %124 : vector<8x64xf32>
    %126 = arith.mulf %121, %125 : vector<8x64xf32>
    %127 = vector.extract_strided_slice %126 {offsets = [0, 32], sizes = [8, 32], strides = [1, 1]} : vector<8x64xf32> to vector<8x32xf32>
    %c16 = arith.constant 16 : index
    %c0_52 = arith.constant 0 : index
    %128 = vector.load %arg9[%c16, %c0_52] : memref<64x32xf32, #tpu.memory_space<vmem>>, vector<8x32xf32>
    tpu.vector_store %arg9[%c16, %c0_52], %127 {strides = array<i32>} : memref<64x32xf32, #tpu.memory_space<vmem>>, vector<8x32xf32>,
    %c4 = arith.constant 4 : index
    %c0_53 = arith.constant 0 : index
    %c0_54 = arith.constant 0 : index
    %129 = vector.load %arg0[%c4, %c0_53, %c0_54] : memref<9x8x256xf32, #tpu.memory_space<vmem>>, vector<1x8x256xf32>
    %130 = vector.shape_cast %129 : vector<1x8x256xf32> to vector<8x256xf32>
    %131 = arith.truncf %126 : vector<8x64xf32> to vector<8x64xbf16>
    %cst_55 = arith.constant dense<0.000000e+00> : vector<8x256xf32>
    %132 = tpu.matmul %131, %0, %cst_55 {dimension_numbers = #tpu.dot_dimension_numbers<[1], [0], [0], [1], [0, 0, 1, 1], [], []>} : vector<8x64xbf16>, vector<64x256xbf16>, vector<8x256xf32> -> vector<8x256xf32>
    %133 = arith.addf %132, %130 : vector<8x256xf32>
    %134 = math.tanh %133 : vector<8x256xf32>
    %135 = vector.extract_strided_slice %134 {offsets = [0, 0], sizes = [8, 64], strides = [1, 1]} : vector<8x256xf32> to vector<8x64xf32>
    %cst_56 = arith.constant 5.000000e-01 : f32
    %136 = vector.broadcast %cst_56 : f32 to vector<8x64xf32>
    %137 = arith.mulf %136, %135 : vector<8x64xf32>
    %cst_57 = arith.constant 5.000000e-01 : f32
    %138 = vector.broadcast %cst_57 : f32 to vector<8x64xf32>
    %139 = arith.addf %137, %138 : vector<8x64xf32>
    %140 = vector.extract_strided_slice %134 {offsets = [0, 64], sizes = [8, 64], strides = [1, 1]} : vector<8x256xf32> to vector<8x64xf32>
    %cst_58 = arith.constant 5.000000e-01 : f32
    %141 = vector.broadcast %cst_58 : f32 to vector<8x64xf32>
    %142 = arith.mulf %141, %140 : vector<8x64xf32>
    %cst_59 = arith.constant 5.000000e-01 : f32
    %143 = vector.broadcast %cst_59 : f32 to vector<8x64xf32>
    %144 = arith.addf %142, %143 : vector<8x64xf32>
    %145 = vector.extract_strided_slice %134 {offsets = [0, 128], sizes = [8, 64], strides = [1, 1]} : vector<8x256xf32> to vector<8x64xf32>
    %146 = vector.extract_strided_slice %134 {offsets = [0, 192], sizes = [8, 64], strides = [1, 1]} : vector<8x256xf32> to vector<8x64xf32>
    %cst_60 = arith.constant 5.000000e-01 : f32
    %147 = vector.broadcast %cst_60 : f32 to vector<8x64xf32>
    %148 = arith.mulf %147, %146 : vector<8x64xf32>
    %cst_61 = arith.constant 5.000000e-01 : f32
    %149 = vector.broadcast %cst_61 : f32 to vector<8x64xf32>
    %150 = arith.addf %148, %149 : vector<8x64xf32>
    %151 = arith.mulf %144, %124 : vector<8x64xf32>
    %152 = arith.mulf %139, %145 : vector<8x64xf32>
    %153 = arith.addf %151, %152 : vector<8x64xf32>
    %154 = math.tanh %153 : vector<8x64xf32>
    %155 = arith.mulf %150, %154 : vector<8x64xf32>
    %156 = vector.extract_strided_slice %155 {offsets = [0, 32], sizes = [8, 32], strides = [1, 1]} : vector<8x64xf32> to vector<8x32xf32>
    %c24 = arith.constant 24 : index
    %c0_62 = arith.constant 0 : index
    %157 = vector.load %arg9[%c24, %c0_62] : memref<64x32xf32, #tpu.memory_space<vmem>>, vector<8x32xf32>
    tpu.vector_store %arg9[%c24, %c0_62], %156 {strides = array<i32>} : memref<64x32xf32, #tpu.memory_space<vmem>>, vector<8x32xf32>,
    %c5 = arith.constant 5 : index
    %c0_63 = arith.constant 0 : index
    %c0_64 = arith.constant 0 : index
    %158 = vector.load %arg0[%c5, %c0_63, %c0_64] : memref<9x8x256xf32, #tpu.memory_space<vmem>>, vector<1x8x256xf32>
    %159 = vector.shape_cast %158 : vector<1x8x256xf32> to vector<8x256xf32>
    %160 = arith.truncf %155 : vector<8x64xf32> to vector<8x64xbf16>
    %cst_65 = arith.constant dense<0.000000e+00> : vector<8x256xf32>
    %161 = tpu.matmul %160, %0, %cst_65 {dimension_numbers = #tpu.dot_dimension_numbers<[1], [0], [0], [1], [0, 0, 1, 1], [], []>} : vector<8x64xbf16>, vector<64x256xbf16>, vector<8x256xf32> -> vector<8x256xf32>
    %162 = arith.addf %161, %159 : vector<8x256xf32>
    %163 = math.tanh %162 : vector<8x256xf32>
    %164 = vector.extract_strided_slice %163 {offsets = [0, 0], sizes = [8, 64], strides = [1, 1]} : vector<8x256xf32> to vector<8x64xf32>
    %cst_66 = arith.constant 5.000000e-01 : f32
    %165 = vector.broadcast %cst_66 : f32 to vector<8x64xf32>
    %166 = arith.mulf %165, %164 : vector<8x64xf32>
    %cst_67 = arith.constant 5.000000e-01 : f32
    %167 = vector.broadcast %cst_67 : f32 to vector<8x64xf32>
    %168 = arith.addf %166, %167 : vector<8x64xf32>
    %169 = vector.extract_strided_slice %163 {offsets = [0, 64], sizes = [8, 64], strides = [1, 1]} : vector<8x256xf32> to vector<8x64xf32>
    %cst_68 = arith.constant 5.000000e-01 : f32
    %170 = vector.broadcast %cst_68 : f32 to vector<8x64xf32>
    %171 = arith.mulf %170, %169 : vector<8x64xf32>
    %cst_69 = arith.constant 5.000000e-01 : f32
    %172 = vector.broadcast %cst_69 : f32 to vector<8x64xf32>
    %173 = arith.addf %171, %172 : vector<8x64xf32>
    %174 = vector.extract_strided_slice %163 {offsets = [0, 128], sizes = [8, 64], strides = [1, 1]} : vector<8x256xf32> to vector<8x64xf32>
    %175 = vector.extract_strided_slice %163 {offsets = [0, 192], sizes = [8, 64], strides = [1, 1]} : vector<8x256xf32> to vector<8x64xf32>
    %cst_70 = arith.constant 5.000000e-01 : f32
    %176 = vector.broadcast %cst_70 : f32 to vector<8x64xf32>
    %177 = arith.mulf %176, %175 : vector<8x64xf32>
    %cst_71 = arith.constant 5.000000e-01 : f32
    %178 = vector.broadcast %cst_71 : f32 to vector<8x64xf32>
    %179 = arith.addf %177, %178 : vector<8x64xf32>
    %180 = arith.mulf %173, %153 : vector<8x64xf32>
    %181 = arith.mulf %168, %174 : vector<8x64xf32>
    %182 = arith.addf %180, %181 : vector<8x64xf32>
    %183 = math.tanh %182 : vector<8x64xf32>
    %184 = arith.mulf %179, %183 : vector<8x64xf32>
    %185 = vector.extract_strided_slice %184 {offsets = [0, 32], sizes = [8, 32], strides = [1, 1]} : vector<8x64xf32> to vector<8x32xf32>
    %c32 = arith.constant 32 : index
    %c0_72 = arith.constant 0 : index
    %186 = vector.load %arg9[%c32, %c0_72] : memref<64x32xf32, #tpu.memory_space<vmem>>, vector<8x32xf32>
    tpu.vector_store %arg9[%c32, %c0_72], %185 {strides = array<i32>} : memref<64x32xf32, #tpu.memory_space<vmem>>, vector<8x32xf32>,
    %c6 = arith.constant 6 : index
    %c0_73 = arith.constant 0 : index
    %c0_74 = arith.constant 0 : index
    %187 = vector.load %arg0[%c6, %c0_73, %c0_74] : memref<9x8x256xf32, #tpu.memory_space<vmem>>, vector<1x8x256xf32>
    %188 = vector.shape_cast %187 : vector<1x8x256xf32> to vector<8x256xf32>
    %189 = arith.truncf %184 : vector<8x64xf32> to vector<8x64xbf16>
    %cst_75 = arith.constant dense<0.000000e+00> : vector<8x256xf32>
    %190 = tpu.matmul %189, %0, %cst_75 {dimension_numbers = #tpu.dot_dimension_numbers<[1], [0], [0], [1], [0, 0, 1, 1], [], []>} : vector<8x64xbf16>, vector<64x256xbf16>, vector<8x256xf32> -> vector<8x256xf32>
    %191 = arith.addf %190, %188 : vector<8x256xf32>
    %192 = math.tanh %191 : vector<8x256xf32>
    %193 = vector.extract_strided_slice %192 {offsets = [0, 0], sizes = [8, 64], strides = [1, 1]} : vector<8x256xf32> to vector<8x64xf32>
    %cst_76 = arith.constant 5.000000e-01 : f32
    %194 = vector.broadcast %cst_76 : f32 to vector<8x64xf32>
    %195 = arith.mulf %194, %193 : vector<8x64xf32>
    %cst_77 = arith.constant 5.000000e-01 : f32
    %196 = vector.broadcast %cst_77 : f32 to vector<8x64xf32>
    %197 = arith.addf %195, %196 : vector<8x64xf32>
    %198 = vector.extract_strided_slice %192 {offsets = [0, 64], sizes = [8, 64], strides = [1, 1]} : vector<8x256xf32> to vector<8x64xf32>
    %cst_78 = arith.constant 5.000000e-01 : f32
    %199 = vector.broadcast %cst_78 : f32 to vector<8x64xf32>
    %200 = arith.mulf %199, %198 : vector<8x64xf32>
    %cst_79 = arith.constant 5.000000e-01 : f32
    %201 = vector.broadcast %cst_79 : f32 to vector<8x64xf32>
    %202 = arith.addf %200, %201 : vector<8x64xf32>
    %203 = vector.extract_strided_slice %192 {offsets = [0, 128], sizes = [8, 64], strides = [1, 1]} : vector<8x256xf32> to vector<8x64xf32>
    %204 = vector.extract_strided_slice %192 {offsets = [0, 192], sizes = [8, 64], strides = [1, 1]} : vector<8x256xf32> to vector<8x64xf32>
    %cst_80 = arith.constant 5.000000e-01 : f32
    %205 = vector.broadcast %cst_80 : f32 to vector<8x64xf32>
    %206 = arith.mulf %205, %204 : vector<8x64xf32>
    %cst_81 = arith.constant 5.000000e-01 : f32
    %207 = vector.broadcast %cst_81 : f32 to vector<8x64xf32>
    %208 = arith.addf %206, %207 : vector<8x64xf32>
    %209 = arith.mulf %202, %182 : vector<8x64xf32>
    %210 = arith.mulf %197, %203 : vector<8x64xf32>
    %211 = arith.addf %209, %210 : vector<8x64xf32>
    %212 = math.tanh %211 : vector<8x64xf32>
    %213 = arith.mulf %208, %212 : vector<8x64xf32>
    %214 = vector.extract_strided_slice %213 {offsets = [0, 32], sizes = [8, 32], strides = [1, 1]} : vector<8x64xf32> to vector<8x32xf32>
    %c40 = arith.constant 40 : index
    %c0_82 = arith.constant 0 : index
    %215 = vector.load %arg9[%c40, %c0_82] : memref<64x32xf32, #tpu.memory_space<vmem>>, vector<8x32xf32>
    tpu.vector_store %arg9[%c40, %c0_82], %214 {strides = array<i32>} : memref<64x32xf32, #tpu.memory_space<vmem>>, vector<8x32xf32>,
    %c7 = arith.constant 7 : index
    %c0_83 = arith.constant 0 : index
    %c0_84 = arith.constant 0 : index
    %216 = vector.load %arg0[%c7, %c0_83, %c0_84] : memref<9x8x256xf32, #tpu.memory_space<vmem>>, vector<1x8x256xf32>
    %217 = vector.shape_cast %216 : vector<1x8x256xf32> to vector<8x256xf32>
    %218 = arith.truncf %213 : vector<8x64xf32> to vector<8x64xbf16>
    %cst_85 = arith.constant dense<0.000000e+00> : vector<8x256xf32>
    %219 = tpu.matmul %218, %0, %cst_85 {dimension_numbers = #tpu.dot_dimension_numbers<[1], [0], [0], [1], [0, 0, 1, 1], [], []>} : vector<8x64xbf16>, vector<64x256xbf16>, vector<8x256xf32> -> vector<8x256xf32>
    %220 = arith.addf %219, %217 : vector<8x256xf32>
    %221 = math.tanh %220 : vector<8x256xf32>
    %222 = vector.extract_strided_slice %221 {offsets = [0, 0], sizes = [8, 64], strides = [1, 1]} : vector<8x256xf32> to vector<8x64xf32>
    %cst_86 = arith.constant 5.000000e-01 : f32
    %223 = vector.broadcast %cst_86 : f32 to vector<8x64xf32>
    %224 = arith.mulf %223, %222 : vector<8x64xf32>
    %cst_87 = arith.constant 5.000000e-01 : f32
    %225 = vector.broadcast %cst_87 : f32 to vector<8x64xf32>
    %226 = arith.addf %224, %225 : vector<8x64xf32>
    %227 = vector.extract_strided_slice %221 {offsets = [0, 64], sizes = [8, 64], strides = [1, 1]} : vector<8x256xf32> to vector<8x64xf32>
    %cst_88 = arith.constant 5.000000e-01 : f32
    %228 = vector.broadcast %cst_88 : f32 to vector<8x64xf32>
    %229 = arith.mulf %228, %227 : vector<8x64xf32>
    %cst_89 = arith.constant 5.000000e-01 : f32
    %230 = vector.broadcast %cst_89 : f32 to vector<8x64xf32>
    %231 = arith.addf %229, %230 : vector<8x64xf32>
    %232 = vector.extract_strided_slice %221 {offsets = [0, 128], sizes = [8, 64], strides = [1, 1]} : vector<8x256xf32> to vector<8x64xf32>
    %233 = vector.extract_strided_slice %221 {offsets = [0, 192], sizes = [8, 64], strides = [1, 1]} : vector<8x256xf32> to vector<8x64xf32>
    %cst_90 = arith.constant 5.000000e-01 : f32
    %234 = vector.broadcast %cst_90 : f32 to vector<8x64xf32>
    %235 = arith.mulf %234, %233 : vector<8x64xf32>
    %cst_91 = arith.constant 5.000000e-01 : f32
    %236 = vector.broadcast %cst_91 : f32 to vector<8x64xf32>
    %237 = arith.addf %235, %236 : vector<8x64xf32>
    %238 = arith.mulf %231, %211 : vector<8x64xf32>
    %239 = arith.mulf %226, %232 : vector<8x64xf32>
    %240 = arith.addf %238, %239 : vector<8x64xf32>
    %241 = math.tanh %240 : vector<8x64xf32>
    %242 = arith.mulf %237, %241 : vector<8x64xf32>
    %243 = vector.extract_strided_slice %242 {offsets = [0, 32], sizes = [8, 32], strides = [1, 1]} : vector<8x64xf32> to vector<8x32xf32>
    %c48 = arith.constant 48 : index
    %c0_92 = arith.constant 0 : index
    %244 = vector.load %arg9[%c48, %c0_92] : memref<64x32xf32, #tpu.memory_space<vmem>>, vector<8x32xf32>
    tpu.vector_store %arg9[%c48, %c0_92], %243 {strides = array<i32>} : memref<64x32xf32, #tpu.memory_space<vmem>>, vector<8x32xf32>,
    %c8_93 = arith.constant 8 : index
    %c0_94 = arith.constant 0 : index
    %c0_95 = arith.constant 0 : index
    %245 = vector.load %arg0[%c8_93, %c0_94, %c0_95] : memref<9x8x256xf32, #tpu.memory_space<vmem>>, vector<1x8x256xf32>
    %246 = vector.shape_cast %245 : vector<1x8x256xf32> to vector<8x256xf32>
    %247 = arith.truncf %242 : vector<8x64xf32> to vector<8x64xbf16>
    %cst_96 = arith.constant dense<0.000000e+00> : vector<8x256xf32>
    %248 = tpu.matmul %247, %0, %cst_96 {dimension_numbers = #tpu.dot_dimension_numbers<[1], [0], [0], [1], [0, 0, 1, 1], [], []>} : vector<8x64xbf16>, vector<64x256xbf16>, vector<8x256xf32> -> vector<8x256xf32>
    %249 = arith.addf %248, %246 : vector<8x256xf32>
    %250 = math.tanh %249 : vector<8x256xf32>
    %251 = vector.extract_strided_slice %250 {offsets = [0, 0], sizes = [8, 64], strides = [1, 1]} : vector<8x256xf32> to vector<8x64xf32>
    %cst_97 = arith.constant 5.000000e-01 : f32
    %252 = vector.broadcast %cst_97 : f32 to vector<8x64xf32>
    %253 = arith.mulf %252, %251 : vector<8x64xf32>
    %cst_98 = arith.constant 5.000000e-01 : f32
    %254 = vector.broadcast %cst_98 : f32 to vector<8x64xf32>
    %255 = arith.addf %253, %254 : vector<8x64xf32>
    %256 = vector.extract_strided_slice %250 {offsets = [0, 64], sizes = [8, 64], strides = [1, 1]} : vector<8x256xf32> to vector<8x64xf32>
    %cst_99 = arith.constant 5.000000e-01 : f32
    %257 = vector.broadcast %cst_99 : f32 to vector<8x64xf32>
    %258 = arith.mulf %257, %256 : vector<8x64xf32>
    %cst_100 = arith.constant 5.000000e-01 : f32
    %259 = vector.broadcast %cst_100 : f32 to vector<8x64xf32>
    %260 = arith.addf %258, %259 : vector<8x64xf32>
    %261 = vector.extract_strided_slice %250 {offsets = [0, 128], sizes = [8, 64], strides = [1, 1]} : vector<8x256xf32> to vector<8x64xf32>
    %262 = vector.extract_strided_slice %250 {offsets = [0, 192], sizes = [8, 64], strides = [1, 1]} : vector<8x256xf32> to vector<8x64xf32>
    %cst_101 = arith.constant 5.000000e-01 : f32
    %263 = vector.broadcast %cst_101 : f32 to vector<8x64xf32>
    %264 = arith.mulf %263, %262 : vector<8x64xf32>
    %cst_102 = arith.constant 5.000000e-01 : f32
    %265 = vector.broadcast %cst_102 : f32 to vector<8x64xf32>
    %266 = arith.addf %264, %265 : vector<8x64xf32>
    %267 = arith.mulf %260, %240 : vector<8x64xf32>
    %268 = arith.mulf %255, %261 : vector<8x64xf32>
    %269 = arith.addf %267, %268 : vector<8x64xf32>
    %270 = math.tanh %269 : vector<8x64xf32>
    %271 = arith.mulf %266, %270 : vector<8x64xf32>
    %272 = vector.extract_strided_slice %271 {offsets = [0, 32], sizes = [8, 32], strides = [1, 1]} : vector<8x64xf32> to vector<8x32xf32>
    %c56 = arith.constant 56 : index
    %c0_103 = arith.constant 0 : index
    %273 = vector.load %arg9[%c56, %c0_103] : memref<64x32xf32, #tpu.memory_space<vmem>>, vector<8x32xf32>
    tpu.vector_store %arg9[%c56, %c0_103], %272 {strides = array<i32>} : memref<64x32xf32, #tpu.memory_space<vmem>>, vector<8x32xf32>,
    %274 = vector.extract_strided_slice %242 {offsets = [0, 0], sizes = [8, 32], strides = [1, 1]} : vector<8x64xf32> to vector<8x32xf32>
    %c0_104 = arith.constant 0 : index
    %c0_105 = arith.constant 0 : index
    %c0_106 = arith.constant 0 : index
    %275 = vector.load %arg7[%c0_104, %c0_105, %c0_106] : memref<2x8x32xf32, #tpu.memory_space<vmem>>, vector<1x8x32xf32>
    %276 = vector.shape_cast %275 : vector<1x8x32xf32> to vector<8x32xf32>
    %277 = vector.shape_cast %274 : vector<8x32xf32> to vector<1x8x32xf32>
    tpu.vector_store %arg7[%c0_104, %c0_105, %c0_106], %277 {strides = array<i32>} : memref<2x8x32xf32, #tpu.memory_space<vmem>>, vector<1x8x32xf32>,
    %278 = vector.extract_strided_slice %271 {offsets = [0, 32], sizes = [8, 32], strides = [1, 1]} : vector<8x64xf32> to vector<8x32xf32>
    %c1_107 = arith.constant 1 : index
    %c0_108 = arith.constant 0 : index
    %c0_109 = arith.constant 0 : index
    %279 = vector.load %arg7[%c1_107, %c0_108, %c0_109] : memref<2x8x32xf32, #tpu.memory_space<vmem>>, vector<1x8x32xf32>
    %280 = vector.shape_cast %279 : vector<1x8x32xf32> to vector<8x32xf32>
    %281 = vector.shape_cast %278 : vector<8x32xf32> to vector<1x8x32xf32>
    tpu.vector_store %arg7[%c1_107, %c0_108, %c0_109], %281 {strides = array<i32>} : memref<2x8x32xf32, #tpu.memory_space<vmem>>, vector<1x8x32xf32>,
    %282 = vector.extract_strided_slice %240 {offsets = [0, 0], sizes = [8, 32], strides = [1, 1]} : vector<8x64xf32> to vector<8x32xf32>
    %c0_110 = arith.constant 0 : index
    %c0_111 = arith.constant 0 : index
    %c0_112 = arith.constant 0 : index
    %283 = vector.load %arg8[%c0_110, %c0_111, %c0_112] : memref<2x8x32xf32, #tpu.memory_space<vmem>>, vector<1x8x32xf32>
    %284 = vector.shape_cast %283 : vector<1x8x32xf32> to vector<8x32xf32>
    %285 = vector.shape_cast %282 : vector<8x32xf32> to vector<1x8x32xf32>
    tpu.vector_store %arg8[%c0_110, %c0_111, %c0_112], %285 {strides = array<i32>} : memref<2x8x32xf32, #tpu.memory_space<vmem>>, vector<1x8x32xf32>,
    %286 = vector.extract_strided_slice %269 {offsets = [0, 32], sizes = [8, 32], strides = [1, 1]} : vector<8x64xf32> to vector<8x32xf32>
    %c1_113 = arith.constant 1 : index
    %c0_114 = arith.constant 0 : index
    %c0_115 = arith.constant 0 : index
    %287 = vector.load %arg8[%c1_113, %c0_114, %c0_115] : memref<2x8x32xf32, #tpu.memory_space<vmem>>, vector<1x8x32xf32>
    %288 = vector.shape_cast %287 : vector<1x8x32xf32> to vector<8x32xf32>
    %289 = vector.shape_cast %286 : vector<8x32xf32> to vector<1x8x32xf32>
    tpu.vector_store %arg8[%c1_113, %c0_114, %c0_115], %289 {strides = array<i32>} : memref<2x8x32xf32, #tpu.memory_space<vmem>>, vector<1x8x32xf32>,
    %c0_116 = arith.constant 0 : index
    %c0_117 = arith.constant 0 : index
    %290 = vector.load %arg9[%c0_116, %c0_117] : memref<64x32xf32, #tpu.memory_space<vmem>>, vector<64x32xf32>
    %291 = arith.truncf %290 : vector<64x32xf32> to vector<64x32xbf16>
    %c0_118 = arith.constant 0 : index
    %c0_119 = arith.constant 0 : index
    %292 = vector.load %arg4[%c0_118, %c0_119] : memref<32x128xbf16, #tpu.memory_space<vmem>>, vector<32x128xbf16>
    %cst_120 = arith.constant dense<0.000000e+00> : vector<64x128xf32>
    %293 = tpu.matmul %291, %292, %cst_120 {dimension_numbers = #tpu.dot_dimension_numbers<[1], [0], [0], [1], [0, 0, 1, 1], [], []>} : vector<64x32xbf16>, vector<32x128xbf16>, vector<64x128xf32> -> vector<64x128xf32>
    %c0_121 = arith.constant 0 : index
    %c0_122 = arith.constant 0 : index
    %294 = vector.load %arg5[%c0_121, %c0_122] : memref<1x128xf32, #tpu.memory_space<vmem>>, vector<1x128xf32>
    %295 = vector.broadcast %294 : vector<1x128xf32> to vector<64x128xf32>
    %296 = arith.addf %293, %295 : vector<64x128xf32>
    %c0_123 = arith.constant 0 : index
    %c0_124 = arith.constant 0 : index
    %297 = vector.load %arg6[%c0_123, %c0_124] : memref<64x128xf32, #tpu.memory_space<vmem>>, vector<64x128xf32>
    tpu.vector_store %arg6[%c0_123, %c0_124], %296 {strides = array<i32>} : memref<64x128xf32, #tpu.memory_space<vmem>>, vector<64x128xf32>,
    return
  }
}

</mosaic_0001>

<bundles_post_ra>
// kernel: tpu_custom_call.1
= control target key start
LH: loop header
LB: loop body
LE: loop exit
PB: predicated region body
PF: predicated region fallthrough
CT: control target
= control target key end

     0   :  { %14 = vsyncpa [#allocation4], 0  ;;  %s1681_s0 = inlined_call_operand.hbm [shape: f32[9,8,256], index: 0, kind: input, shape index: {}]   ;;  %s1682_s1 = inlined_call_operand.hbm [shape: f32[2,8,32], index: 1, kind: input, shape index: {}]   ;;  %s1683_s2 = inlined_call_operand.hbm [shape: f32[2,8,32], index: 2, kind: input, shape index: {}]   ;;  %s1684_s3 = inlined_call_operand.hbm [shape: bf16[64,256], index: 3, kind: input, shape index: {}]   ;;  %s1685_s4 = inlined_call_operand.hbm [shape: bf16[32,128], index: 4, kind: input, shape index: {}]   ;;  %s1686_s5 = inlined_call_operand.vmem [shape: f32[1,128], index: 5, kind: input, shape index: {}]   ;;  %s1687_s6 = inlined_call_operand.hbm [shape: f32[64,128], index: 6, kind: output, shape index: {0}]   ;;  %s1688_s7 = inlined_call_operand.hbm [shape: f32[2,8,32], index: 7, kind: output, shape index: {1}]   ;;  %s1689_s8 = inlined_call_operand.hbm [shape: f32[2,8,32], index: 8, kind: output, shape index: {2}]  }
   0x1   :  { %15 = vsyncpa [#allocation7], 0 }
   0x2   :  { %16 = vsyncpa [#allocation10], 0 }
   0x3   :  { %17 = vsyncpa [#allocation5], 0 }
   0x4   :  { %18 = vsyncpa [#allocation14], 0  ;;  %s1307_s27 = smov [#allocation6]   ;;  %s1121_s9 = scalar_lea.hbm %s1682_s1, 256 }
   0x5   :  { %s36_s28 = sshll.u32 %s1307_s27, 4  ;;  %p1122_p0 = scmp.ne.s32.totalorder %s1682_s1, %s1121_s9  ;;  %s37_s28 = int_to_ptr.vmem [resolvable:$true] %s36_s28 }
   0x6   :  { %p1125_p1 = scmp.lt.u32.totalorder %s1121_s9, %s1682_s1 }
   0x8   :  { %p1127_p2 = pnand %p1125_p1, %p1122_p0 }
   0xa   :  { %1130 = shalt.err (!%p1127_p2)
}
   0xb   :  { %s1131_s14 = scalar_lea.vmem %s37_s28, 256  ;;  %p1136_p4 = scmp.lt.s32.totalorder %s37_s28, %s37_s28 }
   0xc   :  { %p1132_p3 = scmp.ne.s32.totalorder %s37_s28, %s1131_s14  ;;  %p1137_p5 = scmp.lt.s32.totalorder %s1131_s14, %s1131_s14 }
   0xe   :  { %p1138_p6 = por %p1137_p5, %p1136_p4 }
  0x10   :  { %p1139_p7 = pnand %p1138_p6, %p1132_p3 }
  0x12   :  { %1142 = shalt.err (!%p1139_p7)
}
  0x13   :  { %s1308_s15 = smov 128   ;;  %s1309_s16 = smov 8  }
  0x14   :  { %42 = dma.hbm_to_vmem [thread:$0]  %s1682_s1, 256, %s37_s28, [#allocation7], %s1308_s15, %s1308_s15, %s1309_s16  }
  0x15   :  { %s1310_s19 = smov [#allocation9]   ;;  %s1311_s21 = smov [#allocation3]  }
  0x16   :  { %s60_s20 = sshll.u32 %s1310_s19, 4  ;;  %s24_s22 = sshll.u32 %s1311_s21, 4  ;;  %s61_s20 = int_to_ptr.vmem [resolvable:$true] %s60_s20  ;;  %s25_s22 = int_to_ptr.vmem [resolvable:$true] %s24_s22 }
  0x17   :  { %s1143_s25 = scalar_lea.hbm %s1684_s3, 1024 }
  0x18   :  { %p1144_p8 = scmp.ne.s32.totalorder %s1684_s3, %s1143_s25  ;;  %p1147_p9 = scmp.lt.u32.totalorder %s1143_s25, %s1684_s3 }
  0x1a   :  { %p1149_p10 = pnand %p1147_p9, %p1144_p8 }
  0x1c   :  { %1152 = shalt.err (!%p1149_p10)
}
  0x1d   :  { %s1153_s1 = scalar_lea.vmem %s61_s20, 1024  ;;  %p1158_p12 = scmp.lt.s32.totalorder %s61_s20, %s61_s20 }
  0x1e   :  { %p1154_p11 = scmp.ne.s32.totalorder %s61_s20, %s1153_s1  ;;  %p1159_p13 = scmp.lt.s32.totalorder %s1153_s1, %s1153_s1 }
  0x20   :  { %p1160_p0 = por %p1159_p13, %p1158_p12 }
  0x22   :  { %p1161_p1 = pnand %p1160_p0, %p1154_p11 }
  0x24   :  { %1164 = shalt.err (!%p1161_p1)
}
  0x25   :  { %66 = dma.hbm_to_vmem [thread:$0]  %s1684_s3, 1024, %s61_s20, [#allocation10], %s1308_s15, %s1308_s15, %s1309_s16  }
  0x26   :  { %s1165_s12 = scalar_lea.hbm %s1681_s0, 2304 }
  0x27   :  { %p1166_p2 = scmp.ne.s32.totalorder %s1681_s0, %s1165_s12  ;;  %p1169_p3 = scmp.lt.u32.totalorder %s1165_s12, %s1681_s0 }
  0x29   :  { %p1171_p4 = pnand %p1169_p3, %p1166_p2 }
  0x2b   :  { %1174 = shalt.err (!%p1171_p4)
}
  0x2c   :  { %s1175_s19 = scalar_lea.vmem %s25_s22, 2304  ;;  %p1180_p6 = scmp.lt.s32.totalorder %s25_s22, %s25_s22 }
  0x2d   :  { %p1176_p5 = scmp.ne.s32.totalorder %s25_s22, %s1175_s19  ;;  %p1181_p7 = scmp.lt.s32.totalorder %s1175_s19, %s1175_s19 }
  0x2f   :  { %p1182_p8 = por %p1181_p7, %p1180_p6 }
  0x31   :  { %p1183_p9 = pnand %p1182_p8, %p1176_p5 }
  0x33   :  { %1186 = shalt.err (!%p1183_p9)
}
  0x34   :  { %s1312_s3 = smov 256   ;;  %s1313_s20 = smov 16  }
  0x35   :  { %30 = dma.hbm_to_vmem [thread:$0]  %s1681_s0, 2304, %s25_s22, [#allocation4], %s1312_s3, %s1312_s3, %s1313_s20  }
  0x36   :  { %s1314_s24 = smov [#allocation8]   ;;  %s1315_s26 = smov [#allocation11]  }
  0x37   :  { %s48_s25 = sshll.u32 %s1314_s24, 4  ;;  %s72_s27 = sshll.u32 %s1315_s26, 4  ;;  %s49_s25 = int_to_ptr.vmem [resolvable:$true] %s48_s25  ;;  %s73_s27 = int_to_ptr.vmem [resolvable:$true] %s72_s27 }
  0x38   :  { %s1187_s1 = scalar_lea.hbm %s1683_s2, 256 }
  0x39   :  { %p1188_p10 = scmp.ne.s32.totalorder %s1683_s2, %s1187_s1  ;;  %p1191_p11 = scmp.lt.u32.totalorder %s1187_s1, %s1683_s2 }
  0x3b   :  { %p1193_p12 = pnand %p1191_p11, %p1188_p10 }
  0x3d   :  { %1196 = shalt.err (!%p1193_p12)
}
  0x3e   :  { %s1197_s0 = scalar_lea.vmem %s49_s25, 256  ;;  %p1202_p0 = scmp.lt.s32.totalorder %s49_s25, %s49_s25 }
  0x3f   :  { %p1198_p13 = scmp.ne.s32.totalorder %s49_s25, %s1197_s0  ;;  %p1203_p1 = scmp.lt.s32.totalorder %s1197_s0, %s1197_s0 }
  0x41   :  { %p1204_p2 = por %p1203_p1, %p1202_p0 }
  0x43   :  { %p1205_p3 = pnand %p1204_p2, %p1198_p13 }
  0x45   :  { %1208 = shalt.err (!%p1205_p3)
}
  0x46   :  { %54 = dma.hbm_to_vmem [thread:$0]  %s1683_s2, 256, %s49_s25, [#allocation7], %s1308_s15, %s1308_s15, %s1309_s16  }
  0x47   :  { %s1209_s17 = scalar_lea.hbm %s1685_s4, 256 }
  0x48   :  { %p1210_p4 = scmp.ne.s32.totalorder %s1685_s4, %s1209_s17  ;;  %p1213_p5 = scmp.lt.u32.totalorder %s1209_s17, %s1685_s4 }
  0x4a   :  { %p1215_p6 = pnand %p1213_p5, %p1210_p4 }
  0x4c   :  { %1218 = shalt.err (!%p1215_p6)
}
  0x4d   :  { %s1219_s21 = scalar_lea.vmem %s73_s27, 256  ;;  %p1224_p8 = scmp.lt.s32.totalorder %s73_s27, %s73_s27 }
  0x4e   :  { %p1220_p7 = scmp.ne.s32.totalorder %s73_s27, %s1219_s21  ;;  %p1225_p9 = scmp.lt.s32.totalorder %s1219_s21, %s1219_s21 }
  0x50   :  { %p1226_p10 = por %p1225_p9, %p1224_p8 }
  0x52   :  { %p1227_p11 = pnand %p1226_p10, %p1220_p7 }
  0x54   :  { %1230 = shalt.err (!%p1227_p11)
}
  0x55   :  { %s1316_s2 = smov 64   ;;  %s1317_s23 = smov 4  }
  0x56   :  { %78 = dma.hbm_to_vmem [thread:$0]  %s1685_s4, 256, %s73_s27, [#allocation10], %s1316_s2, %s1316_s2, %s1317_s23  }
  0x57   :  { %1297 = dma.done.wait [#allocation4], 2304  }
  0x58   :  { %1298 = vsyncadd [#allocation4], 4294964992 }
  0x59   :  { %1299 = dma.done.wait [#allocation7], 512  }
  0x5a   :  { %1300 = vsyncadd [#allocation7], 4294966784 }
  0x5b   :  { %1301 = dma.done.wait [#allocation10], 1280  }
  0x5c   :  { %1302 = vsyncadd [#allocation10], 4294966016  ;;  %v1318_v0 = vmov 0   ;;  %v106_v1 = vld [vmem:[#allocation6 + $0x8] sm:$0xff]  ;;  %s1319_s26 = smov 32   ;;  %v108_v7 = vld [vmem:[#allocation8 + $0x8] sm:$0xff] }
  0x5d   :  { %201 = vmatprep.mubr.bf16.mxu0 %v1318_v0  ;;  %278 = vmatprep.mubr.bf16.mxu1 %v1318_v0  ;;  %v1442_v2 = vld [vmem:[#allocation9 + $0x4] ss:$8 sps:$4 sm:$0xff]   ;;  %v1444_v3 = vld [vmem:[#allocation9] ss:$8 sps:$4 sm:$0xff]   ;;  %v1446_v4 = vld [vmem:[#allocation9 + $0x14] ss:$8 sps:$4 sm:$0xff]  }
  0x5e   :  { %111 = vrot.lane.b32.xlu0 %v106_v1, %s1319_s26  ;;  %169 = vmatprep.subr.bf16.mxu0 %v1442_v2  ;;  %v1451_v5 = vld [vmem:[#allocation9 + $0x10] ss:$8 sps:$4 sm:$0xff]   ;;  %v1455_v6 = vld [vmem:[#allocation9 + $0x24] ss:$8 sps:$4 sm:$0xff]   ;;  %v1460_v8 = vld [vmem:[#allocation9 + $0x20] ss:$8 sps:$4 sm:$0xff]  }
  0x5f   :  { %246 = vmatprep.subr.bf16.mxu1 %v1442_v2  ;;  %170 = vmatpush1.bf16.msra.mxu0 %v1444_v3  ;;  %v1464_v9 = vld [vmem:[#allocation9 + $0x34] ss:$8 sps:$4 sm:$0xff]   ;;  %v1468_v10 = vld [vmem:[#allocation9 + $0x30] ss:$8 sps:$4 sm:$0xff]   ;;  %v109_v11 = vld [vmem:[#allocation6] sm:$0xff]  ;;  %vm114_vm0 = vcmask 261120  }
  0x60   :  { %247 = vmatpush1.bf16.msra.mxu1 %v1444_v3  ;;  %171 = vmatprep.subr.bf16.mxu0 %v1446_v4  ;;  %vm165_vm1 = vcmask 523264   ;;  %v116_v15 = vld [vmem:[#allocation8] sm:$0xff]  ;;  %v123_v20 = vld [vmem:[#allocation3 + $0x8] sm:$0xff]  ;;  %v240_v44 = vld [vmem:[#allocation3 + $0x10] sm:$0xff]  ;;  %s1320_s29 = smov [#allocation13]  }
  0x61   :  { %248 = vmatprep.subr.bf16.mxu1 %v1446_v4  ;;  %v122_v18 = vld [vmem:[#allocation3] sm:$0xff]  ;;  %v241_v46 = vld [vmem:[#allocation3 + $0x18] sm:$0xff]  ;;  %s962_s30 = sshll.u32 %s1320_s29, 4  ;;  %s963_s30 = int_to_ptr.vmem [resolvable:$true] %s962_s30 }
  0x62   :  { %118 = vrot.lane.b32.xlu0 %v108_v7, %s1319_s26  ;;  %s1231_s1 = scalar_lea.vmem %s963_s30, 256  ;;  %p1236_p13 = scmp.lt.s32.totalorder %s963_s30, %s963_s30 }
  0x63   :  { %172 = vmatpush1.bf16.msra.mxu0 %v1451_v5  ;;  %p1232_p12 = scmp.ne.s32.totalorder %s963_s30, %s1231_s1  ;;  %p1237_p0 = scmp.lt.s32.totalorder %s1231_s1, %s1231_s1 }
  0x64   :  { %249 = vmatpush1.bf16.msra.mxu1 %v1451_v5  ;;  %173 = vmatprep.subr.bf16.mxu0 %v1455_v6 }
  0x65   :  { %250 = vmatprep.subr.bf16.mxu1 %v1455_v6  ;;  %p1238_p1 = por %p1237_p0, %p1236_p13 }
  0x67   :  { %174 = vmatpush1.bf16.msra.mxu0 %v1460_v8  ;;  %p1239_p2 = pnand %p1238_p1, %p1232_p12 }
  0x68   :  { %251 = vmatpush1.bf16.msra.mxu1 %v1460_v8  ;;  %175 = vmatprep.subr.bf16.mxu0 %v1464_v9 }
  0x69   :  { %252 = vmatprep.subr.bf16.mxu1 %v1464_v9 }
  0x6b   :  { %176 = vmatpush1.bf16.msra.mxu0 %v1468_v10 }
  0x6c   :  { %253 = vmatpush1.bf16.msra.mxu1 %v1468_v10  ;;  %321 = vmatprep.subr.bf16.mxu0 %v1442_v2 }
  0x6d   :  { %392 = vmatprep.subr.bf16.mxu1 %v1442_v2 }
  0xd0   :  { %v112_v12 = vpop.permute.xlu0 %111 }
  0xd1   :  { %v115_v13 = vsel %vm114_vm0, %v109_v11, %v112_v12 }
  0xd2   :  { %v124_v14 = vpack.c.bf16 %v115_v13, %v115_v13 }
  0xd4   :  { %1003 = vmatmul.mubr.msk.bf16.vlgmr.msra.gmra.mrb[0].mxu0 %vm165_vm1, %v124_v14  ;;  %v119_v16 = vpop.permute.xlu0 %118  ;;  %v313_v14 = vld [vmem:[#allocation3 + $0x28] sm:$0xff] }
  0xd5   :  { %322 = vmatpush1.bf16.msra.mxu0 %v1444_v3  ;;  %353 = vmatprep.mubr.bf16.mxu0 %v1318_v0  ;;  %v121_v17 = vsel %vm114_vm0, %v116_v15, %v119_v16 }
  0xd6   :  { %323 = vmatprep.subr.bf16.mxu0 %v1446_v4  ;;  %217 = vrot.lane.b32.xlu1 %v121_v17, %s1316_s2 }
  0xd9   :  { %324 = vmatpush1.bf16.msra.mxu0 %v1451_v5 }
  0xda   :  { %325 = vmatprep.subr.bf16.mxu0 %v1455_v6 }
  0xdd   :  { %326 = vmatpush1.bf16.msra.mxu0 %v1460_v8 }
  0xde   :  { %327 = vmatprep.subr.bf16.mxu0 %v1464_v9 }
  0xe1   :  { %328 = vmatpush1.bf16.msra.mxu0 %v1468_v10 }
  0xe2   :  { %463 = vmatprep.subr.bf16.mxu0 %v1442_v2 }
 0x148   :  { %v218_v31 = vpop.permute.xlu1 %217 }
 0x1a7   :  { %v203_v19 = vpop.f32.mrb[0].mxu0 }
 0x1a8   :  { %v204_v21 = vadd.f32 %v203_v19, %v122_v18  ;;  %v205_v22 = vpop.f32.mrb[1].mxu0 }
 0x1a9   :  { %v207_v23 = vpop.f32.mrb[2].mxu0  ;;  %v206_v24 = vadd.f32 %v205_v22, %v123_v20 }
 0x1aa   :  { %1067 = vtanh.f32 %v204_v21  ;;  %v208_v25 = vpop.f32.mrb[3].mxu0 }
 0x1ab   :  { %1069 = vtanh.f32 %v206_v24 }
 0x1b4   :  { %v1068_v26 = vpop.eup %1067 }
 0x1b5   :  { %v212_v27 = vmul.f32 0.5, %v1068_v26  ;;  %v1070_v29 = vpop.eup %1069 }
 0x1b6   :  { %v214_v35 = vmul.f32 0.5, %v1070_v29 }
 0x1b7   :  { %v213_v28 = vadd.f32 0.5, %v212_v27 }
 0x1b8   :  { %v215_v36 = vadd.f32 0.5, %v214_v35 }
 0x1b9   :  { %v221_v30 = vmul.f32 %v1070_v29, %v213_v28  ;;  %v220_v32 = vmul.f32 %v218_v31, %v213_v28 }
 0x1bb   :  { %223 = vrot.lane.b32.xlu1 %v221_v30, %s1316_s2 }
 0x22d   :  { %v224_v33 = vpop.permute.xlu1 %223 }
 0x22e   :  { %v226_v34 = vadd.f32 %v224_v33, %v220_v32 }
 0x230   :  { %1071 = vtanh.f32 %v226_v34  ;;  %235 = vrot.lane.b32.xlu1 %v226_v34, %s1316_s2  ;;  %v383_v34 = vld [vmem:[#allocation3 + $0x30] sm:$0xff] }
 0x23a   :  { %v1072_v37 = vpop.eup %1071 }
 0x23b   :  { %v228_v38 = vmul.f32 %v1072_v37, %v215_v36  ;;  %v384_v36 = vld [vmem:[#allocation3 + $0x38] sm:$0xff] }
 0x23d   :  { %230 = vrot.lane.b32.xlu0 %v228_v38, %s1316_s2 }
 0x2a2   :  { %v236_v39 = vpop.permute.xlu1 %235 }
 0x2a3   :  { %v238_v40 = vsel %vm114_vm0, %v236_v39, %v119_v16 }
 0x2a4   :  { %294 = vrot.lane.b32.xlu0 %v238_v40, %s1316_s2 }
 0x2af   :  { %v231_v41 = vpop.permute.xlu0 %230 }
 0x2b0   :  { %v233_v42 = vsel %vm114_vm0, %v231_v41, %v112_v12  ;;  %v312_v12 = vld [vmem:[#allocation3 + $0x20] sm:$0xff] }
 0x2b1   :  { %v242_v43 = vpack.c.bf16 %v233_v42, %v233_v42 }
 0x2b3   :  { %1004 = vmatmul.mubr.msk.bf16.vlgmr.msra.gmra.mrb[0].mxu1 %vm165_vm1, %v242_v43 }
 0x2b4   :  { %393 = vmatpush1.bf16.msra.mxu1 %v1444_v3  ;;  %424 = vmatprep.mubr.bf16.mxu1 %v1318_v0 }
 0x2b5   :  { %394 = vmatprep.subr.bf16.mxu1 %v1446_v4 }
 0x2b8   :  { %395 = vmatpush1.bf16.msra.mxu1 %v1451_v5 }
 0x2b9   :  { %396 = vmatprep.subr.bf16.mxu1 %v1455_v6 }
 0x2bc   :  { %397 = vmatpush1.bf16.msra.mxu1 %v1460_v8 }
 0x2bd   :  { %398 = vmatprep.subr.bf16.mxu1 %v1464_v9 }
 0x2c0   :  { %399 = vmatpush1.bf16.msra.mxu1 %v1468_v10 }
 0x2c1   :  { %534 = vmatprep.subr.bf16.mxu1 %v1442_v2 }
 0x316   :  { %v295_v57 = vpop.permute.xlu0 %294 }
 0x386   :  { %v280_v45 = vpop.f32.mrb[0].mxu1 }
 0x387   :  { %v281_v47 = vadd.f32 %v280_v45, %v240_v44  ;;  %v282_v48 = vpop.f32.mrb[1].mxu1 }
 0x388   :  { %v284_v49 = vpop.f32.mrb[2].mxu1  ;;  %v283_v50 = vadd.f32 %v282_v48, %v241_v46 }
 0x389   :  { %1073 = vtanh.f32 %v281_v47  ;;  %v285_v51 = vpop.f32.mrb[3].mxu1 }
 0x38a   :  { %1075 = vtanh.f32 %v283_v50 }
 0x393   :  { %v1074_v52 = vpop.eup %1073 }
 0x394   :  { %v289_v53 = vmul.f32 0.5, %v1074_v52  ;;  %v1076_v55 = vpop.eup %1075 }
 0x395   :  { %v291_v61 = vmul.f32 0.5, %v1076_v55 }
 0x396   :  { %v290_v54 = vadd.f32 0.5, %v289_v53 }
 0x397   :  { %v292_v62 = vadd.f32 0.5, %v291_v61 }
 0x398   :  { %v298_v56 = vmul.f32 %v1076_v55, %v290_v54  ;;  %v297_v58 = vmul.f32 %v295_v57, %v290_v54 }
 0x39a   :  { %300 = vrot.lane.b32.xlu1 %v298_v56, %s1316_s2  ;;  %v454_v56 = vld [vmem:[#allocation3 + $0x40] sm:$0xff] }
 0x40c   :  { %v301_v59 = vpop.permute.xlu1 %300 }
 0x40d   :  { %v303_v60 = vadd.f32 %v301_v59, %v297_v58  ;;  %v455_v58 = vld [vmem:[#allocation3 + $0x48] sm:$0xff] }
 0x40f   :  { %1077 = vtanh.f32 %v303_v60 }
 0x419   :  { %v1078_v63 = vpop.eup %1077 }
 0x41a   :  { %v1507_v1 = vmul.f32 %v1078_v63, %v292_v62 }
 0x41c   :  { %v314_v7 = vpack.c.bf16 %v1507_v1, %v1507_v1 }
 0x41e   :  { %316 = vrot.lane.b32.xlu0 %v314_v7, %s1316_s2 }
 0x490   :  { %v317_v11 = vpop.permute.xlu0 %316 }
 0x491   :  { %1005 = vmatmul.mubr.msk.bf16.vlgmr.msra.gmra.mrb[4].mxu0 %vm165_vm1, %v317_v11 }
 0x492   :  { %464 = vmatpush1.bf16.msra.mxu0 %v1444_v3  ;;  %495 = vmatprep.mubr.bf16.mxu0 %v1318_v0 }
 0x493   :  { %465 = vmatprep.subr.bf16.mxu0 %v1446_v4 }
 0x496   :  { %466 = vmatpush1.bf16.msra.mxu0 %v1451_v5 }
 0x497   :  { %467 = vmatprep.subr.bf16.mxu0 %v1455_v6 }
 0x49a   :  { %468 = vmatpush1.bf16.msra.mxu0 %v1460_v8 }
 0x49b   :  { %469 = vmatprep.subr.bf16.mxu0 %v1464_v9 }
 0x49e   :  { %470 = vmatpush1.bf16.msra.mxu0 %v1468_v10 }
 0x49f   :  { %605 = vmatprep.subr.bf16.mxu0 %v1442_v2 }
 0x564   :  { %v355_v13 = vpop.f32.mrb[4].mxu0 }
 0x565   :  { %v356_v15 = vadd.f32 %v355_v13, %v312_v12  ;;  %v357_v16 = vpop.f32.mrb[5].mxu0 }
 0x566   :  { %v359_v17 = vpop.f32.mrb[6].mxu0  ;;  %v358_v18 = vadd.f32 %v357_v16, %v313_v14 }
 0x567   :  { %1079 = vtanh.f32 %v356_v15  ;;  %v360_v19 = vpop.f32.mrb[7].mxu0 }
 0x568   :  { %1081 = vtanh.f32 %v358_v18 }
 0x571   :  { %v1080_v20 = vpop.eup %1079 }
 0x572   :  { %v364_v21 = vmul.f32 0.5, %v1080_v20  ;;  %v1082_v23 = vpop.eup %1081 }
 0x573   :  { %v366_v28 = vmul.f32 0.5, %v1082_v23 }
 0x574   :  { %v365_v22 = vadd.f32 0.5, %v364_v21 }
 0x575   :  { %v367_v29 = vadd.f32 0.5, %v366_v28 }
 0x576   :  { %v369_v24 = vmul.f32 %v1082_v23, %v365_v22  ;;  %v368_v25 = vmul.f32 %v365_v22, %v303_v60  ;;  %v525_v23 = vld [vmem:[#allocation3 + $0x50] sm:$0xff] }
 0x578   :  { %371 = vrot.lane.b32.xlu1 %v369_v24, %s1316_s2 }
 0x5ea   :  { %v372_v26 = vpop.permute.xlu1 %371 }
 0x5eb   :  { %v374_v27 = vadd.f32 %v372_v26, %v368_v25  ;;  %v526_v25 = vld [vmem:[#allocation3 + $0x58] sm:$0xff] }
 0x5ed   :  { %1083 = vtanh.f32 %v374_v27 }
 0x5f7   :  { %v1084_v30 = vpop.eup %1083 }
 0x5f8   :  { %v1523_v31 = vmul.f32 %v1084_v30, %v367_v29 }
 0x5fa   :  { %v385_v32 = vpack.c.bf16 %v1523_v31, %v1523_v31 }
 0x5fc   :  { %387 = vrot.lane.b32.xlu0 %v385_v32, %s1316_s2 }
 0x66e   :  { %v388_v33 = vpop.permute.xlu0 %387 }
 0x66f   :  { %1006 = vmatmul.mubr.msk.bf16.vlgmr.msra.gmra.mrb[4].mxu1 %vm165_vm1, %v388_v33 }
 0x670   :  { %535 = vmatpush1.bf16.msra.mxu1 %v1444_v3  ;;  %566 = vmatprep.mubr.bf16.mxu1 %v1318_v0 }
 0x671   :  { %536 = vmatprep.subr.bf16.mxu1 %v1446_v4 }
 0x674   :  { %537 = vmatpush1.bf16.msra.mxu1 %v1451_v5 }
 0x675   :  { %538 = vmatprep.subr.bf16.mxu1 %v1455_v6 }
 0x678   :  { %539 = vmatpush1.bf16.msra.mxu1 %v1460_v8 }
 0x679   :  { %540 = vmatprep.subr.bf16.mxu1 %v1464_v9 }
 0x67c   :  { %541 = vmatpush1.bf16.msra.mxu1 %v1468_v10 }
 0x67d   :  { %676 = vmatprep.subr.bf16.mxu1 %v1442_v2 }
 0x742   :  { %v426_v35 = vpop.f32.mrb[4].mxu1 }
 0x743   :  { %v427_v37 = vadd.f32 %v426_v35, %v383_v34  ;;  %v428_v38 = vpop.f32.mrb[5].mxu1 }
 0x744   :  { %v430_v39 = vpop.f32.mrb[6].mxu1  ;;  %v429_v40 = vadd.f32 %v428_v38, %v384_v36 }
 0x745   :  { %1085 = vtanh.f32 %v427_v37  ;;  %v431_v41 = vpop.f32.mrb[7].mxu1 }
 0x746   :  { %1087 = vtanh.f32 %v429_v40 }
 0x74f   :  { %v1086_v42 = vpop.eup %1085 }
 0x750   :  { %v435_v43 = vmul.f32 0.5, %v1086_v42  ;;  %v1088_v45 = vpop.eup %1087 }
 0x751   :  { %v437_v50 = vmul.f32 0.5, %v1088_v45 }
 0x752   :  { %v436_v44 = vadd.f32 0.5, %v435_v43 }
 0x753   :  { %v438_v51 = vadd.f32 0.5, %v437_v50 }
 0x754   :  { %v440_v46 = vmul.f32 %v1088_v45, %v436_v44  ;;  %v439_v47 = vmul.f32 %v436_v44, %v374_v27 }
 0x756   :  { %442 = vrot.lane.b32.xlu1 %v440_v46, %s1316_s2  ;;  %v596_v46 = vld [vmem:[#allocation3 + $0x60] sm:$0xff] }
 0x7c8   :  { %v443_v48 = vpop.permute.xlu1 %442 }
 0x7c9   :  { %v445_v49 = vadd.f32 %v443_v48, %v439_v47  ;;  %v597_v48 = vld [vmem:[#allocation3 + $0x68] sm:$0xff] }
 0x7cb   :  { %1089 = vtanh.f32 %v445_v49 }
 0x7d5   :  { %v1090_v52 = vpop.eup %1089 }
 0x7d6   :  { %v1539_v53 = vmul.f32 %v1090_v52, %v438_v51 }
 0x7d8   :  { %v456_v54 = vpack.c.bf16 %v1539_v53, %v1539_v53 }
 0x7da   :  { %458 = vrot.lane.b32.xlu0 %v456_v54, %s1316_s2 }
 0x84c   :  { %v459_v55 = vpop.permute.xlu0 %458 }
 0x84d   :  { %1007 = vmatmul.mubr.msk.bf16.vlgmr.msra.gmra.mrb[8].mxu0 %vm165_vm1, %v459_v55 }
 0x84e   :  { %606 = vmatpush1.bf16.msra.mxu0 %v1444_v3  ;;  %637 = vmatprep.mubr.bf16.mxu0 %v1318_v0 }
 0x84f   :  { %607 = vmatprep.subr.bf16.mxu0 %v1446_v4 }
 0x852   :  { %608 = vmatpush1.bf16.msra.mxu0 %v1451_v5 }
 0x853   :  { %609 = vmatprep.subr.bf16.mxu0 %v1455_v6 }
 0x856   :  { %610 = vmatpush1.bf16.msra.mxu0 %v1460_v8 }
 0x857   :  { %611 = vmatprep.subr.bf16.mxu0 %v1464_v9 }
 0x85a   :  { %612 = vmatpush1.bf16.msra.mxu0 %v1468_v10 }
 0x85b   :  { %747 = vmatprep.subr.bf16.mxu0 %v1442_v2 }
 0x920   :  { %v497_v57 = vpop.f32.mrb[8].mxu0 }
 0x921   :  { %v498_v59 = vadd.f32 %v497_v57, %v454_v56  ;;  %v499_v60 = vpop.f32.mrb[9].mxu0 }
 0x922   :  { %v501_v61 = vpop.f32.mrb[10].mxu0  ;;  %v500_v62 = vadd.f32 %v499_v60, %v455_v58 }
 0x923   :  { %1091 = vtanh.f32 %v498_v59  ;;  %v502_v63 = vpop.f32.mrb[11].mxu0  ;;  %v667_v61 = vld [vmem:[#allocation3 + $0x70] sm:$0xff] }
 0x924   :  { %1093 = vtanh.f32 %v500_v62  ;;  %v668_v63 = vld [vmem:[#allocation3 + $0x78] sm:$0xff] }
 0x92d   :  { %v1092_v7 = vpop.eup %1091 }
 0x92e   :  { %v506_v11 = vmul.f32 0.5, %v1092_v7  ;;  %v1094_v13 = vpop.eup %1093 }
 0x92f   :  { %v508_v17 = vmul.f32 0.5, %v1094_v13 }
 0x930   :  { %v507_v12 = vadd.f32 0.5, %v506_v11 }
 0x931   :  { %v509_v18 = vadd.f32 0.5, %v508_v17 }
 0x932   :  { %v511_v14 = vmul.f32 %v1094_v13, %v507_v12  ;;  %v510_v15 = vmul.f32 %v507_v12, %v445_v49 }
 0x934   :  { %513 = vrot.lane.b32.xlu1 %v511_v14, %s1316_s2 }
 0x9a6   :  { %v514_v16 = vpop.permute.xlu1 %513 }
 0x9a7   :  { %v516_v2 = vadd.f32 %v514_v16, %v510_v15 }
 0x9a9   :  { %1095 = vtanh.f32 %v516_v2 }
 0x9b3   :  { %v1096_v19 = vpop.eup %1095 }
 0x9b4   :  { %v1555_v20 = vmul.f32 %v1096_v19, %v509_v18 }
 0x9b6   :  { %v527_v21 = vpack.c.bf16 %v1555_v20, %v1555_v20 }
 0x9b8   :  { %529 = vrot.lane.b32.xlu0 %v527_v21, %s1316_s2 }
 0xa2a   :  { %v530_v22 = vpop.permute.xlu0 %529 }
 0xa2b   :  { %1008 = vmatmul.mubr.msk.bf16.vlgmr.msra.gmra.mrb[8].mxu1 %vm165_vm1, %v530_v22 }
 0xa2c   :  { %677 = vmatpush1.bf16.msra.mxu1 %v1444_v3  ;;  %708 = vmatprep.mubr.bf16.mxu1 %v1318_v0 }
 0xa2d   :  { %678 = vmatprep.subr.bf16.mxu1 %v1446_v4 }
 0xa30   :  { %679 = vmatpush1.bf16.msra.mxu1 %v1451_v5 }
 0xa31   :  { %680 = vmatprep.subr.bf16.mxu1 %v1455_v6 }
 0xa34   :  { %681 = vmatpush1.bf16.msra.mxu1 %v1460_v8 }
 0xa35   :  { %682 = vmatprep.subr.bf16.mxu1 %v1464_v9 }
 0xa38   :  { %683 = vmatpush1.bf16.msra.mxu1 %v1468_v10 }
 0xafe   :  { %v568_v24 = vpop.f32.mrb[8].mxu1 }
 0xaff   :  { %v569_v26 = vadd.f32 %v568_v24, %v525_v23  ;;  %v570_v27 = vpop.f32.mrb[9].mxu1 }
 0xb00   :  { %v572_v28 = vpop.f32.mrb[10].mxu1  ;;  %v571_v29 = vadd.f32 %v570_v27, %v526_v25 }
 0xb01   :  { %1097 = vtanh.f32 %v569_v26  ;;  %v573_v30 = vpop.f32.mrb[11].mxu1 }
 0xb02   :  { %1099 = vtanh.f32 %v571_v29 }
 0xb0b   :  { %v1098_v32 = vpop.eup %1097 }
 0xb0c   :  { %v577_v33 = vmul.f32 0.5, %v1098_v32  ;;  %v1100_v35 = vpop.eup %1099 }
 0xb0d   :  { %v579_v40 = vmul.f32 0.5, %v1100_v35 }
 0xb0e   :  { %v578_v34 = vadd.f32 0.5, %v577_v33  ;;  %v738_v33 = vld [vmem:[#allocation3 + $0x80] sm:$0xff] }
 0xb0f   :  { %v580_v41 = vadd.f32 0.5, %v579_v40 }
 0xb10   :  { %v582_v36 = vmul.f32 %v1100_v35, %v578_v34  ;;  %v581_v37 = vmul.f32 %v578_v34, %v516_v2  ;;  %v739_v35 = vld [vmem:[#allocation3 + $0x88] sm:$0xff] }
 0xb12   :  { %584 = vrot.lane.b32.xlu1 %v582_v36, %s1316_s2 }
 0xb84   :  { %v585_v38 = vpop.permute.xlu1 %584 }
 0xb85   :  { %v587_v39 = vadd.f32 %v585_v38, %v581_v37 }
 0xb87   :  { %1101 = vtanh.f32 %v587_v39 }
 0xb91   :  { %v1102_v42 = vpop.eup %1101 }
 0xb92   :  { %v1570_v43 = vmul.f32 %v1102_v42, %v580_v41 }
 0xb94   :  { %v598_v44 = vpack.c.bf16 %v1570_v43, %v1570_v43 }
 0xb96   :  { %600 = vrot.lane.b32.xlu0 %v598_v44, %s1316_s2 }
 0xc08   :  { %v601_v45 = vpop.permute.xlu0 %600 }
 0xc09   :  { %1009 = vmatmul.mubr.msk.bf16.vlgmr.msra.gmra.mrb[12].mxu0 %vm165_vm1, %v601_v45 }
 0xc0a   :  { %748 = vmatpush1.bf16.msra.mxu0 %v1444_v3  ;;  %779 = vmatprep.mubr.bf16.mxu0 %v1318_v0 }
 0xc0b   :  { %749 = vmatprep.subr.bf16.mxu0 %v1446_v4 }
 0xc0e   :  { %750 = vmatpush1.bf16.msra.mxu0 %v1451_v5 }
 0xc0f   :  { %751 = vmatprep.subr.bf16.mxu0 %v1455_v6 }
 0xc12   :  { %752 = vmatpush1.bf16.msra.mxu0 %v1460_v8 }
 0xc13   :  { %753 = vmatprep.subr.bf16.mxu0 %v1464_v9 }
 0xc16   :  { %754 = vmatpush1.bf16.msra.mxu0 %v1468_v10 }
 0xcdc   :  { %v639_v47 = vpop.f32.mrb[12].mxu0 }
 0xcdd   :  { %v640_v49 = vadd.f32 %v639_v47, %v596_v46  ;;  %v641_v50 = vpop.f32.mrb[13].mxu0  ;;  %v1066_v47 = vld [vmem:[#allocation11 + $0x8] sm:$0xff]  }
 0xcde   :  { %v643_v3 = vpop.f32.mrb[14].mxu0  ;;  %v642_v0 = vadd.f32 %v641_v50, %v597_v48 }
 0xcdf   :  { %1103 = vtanh.f32 %v640_v49  ;;  %v644_v51 = vpop.f32.mrb[15].mxu0 }
 0xce0   :  { %1105 = vtanh.f32 %v642_v0 }
 0xce9   :  { %v1104_v4 = vpop.eup %1103 }
 0xcea   :  { %v648_v5 = vmul.f32 0.5, %v1104_v4  ;;  %v1106_v6 = vpop.eup %1105 }
 0xceb   :  { %v650_v55 = vmul.f32 0.5, %v1106_v6 }
 0xcec   :  { %v649_v52 = vadd.f32 0.5, %v648_v5 }
 0xced   :  { %v651_v56 = vadd.f32 0.5, %v650_v55 }
 0xcee   :  { %v653_v54 = vmul.f32 %v1106_v6, %v649_v52  ;;  %v652_v8 = vmul.f32 %v649_v52, %v587_v39 }
 0xcf0   :  { %655 = vrot.lane.b32.xlu1 %v653_v54, %s1316_s2 }
 0xd62   :  { %v656_v9 = vpop.permute.xlu1 %655 }
 0xd63   :  { %v658_v10 = vadd.f32 %v656_v9, %v652_v8 }
 0xd65   :  { %1107 = vtanh.f32 %v658_v10 }
 0xd6f   :  { %v1108_v57 = vpop.eup %1107 }
 0xd70   :  { %v1585_v58 = vmul.f32 %v1108_v57, %v651_v56 }
 0xd72   :  { %v669_v59 = vpack.c.bf16 %v1585_v58, %v1585_v58 }
 0xd74   :  { %671 = vrot.lane.b32.xlu0 %v669_v59, %s1316_s2 }
 0xde6   :  { %v672_v60 = vpop.permute.xlu0 %671 }
 0xde7   :  { %1010 = vmatmul.mubr.msk.bf16.vlgmr.msra.gmra.mrb[12].mxu1 %vm165_vm1, %v672_v60 }
 0xeba   :  { %v710_v62 = vpop.f32.mrb[12].mxu1 }
 0xebb   :  { %v711_v7 = vadd.f32 %v710_v62, %v667_v61  ;;  %v712_v11 = vpop.f32.mrb[13].mxu1 }
 0xebc   :  { %v714_v12 = vpop.f32.mrb[14].mxu1  ;;  %v713_v13 = vadd.f32 %v712_v11, %v668_v63 }
 0xebd   :  { %1109 = vtanh.f32 %v711_v7  ;;  %v715_v14 = vpop.f32.mrb[15].mxu1  ;;  %v1012_v7 = vld [vmem:[%s1686_s5] ss:$0 sm:$0xff] }
 0xebe   :  { %1111 = vtanh.f32 %v713_v13 }
 0xec7   :  { %v1110_v15 = vpop.eup %1109 }
 0xec8   :  { %v719_v16 = vmul.f32 0.5, %v1110_v15  ;;  %v1112_v17 = vpop.eup %1111 }
 0xec9   :  { %v721_v23 = vmul.f32 0.5, %v1112_v17 }
 0xeca   :  { %v720_v2 = vadd.f32 0.5, %v719_v16 }
 0xecb   :  { %v722_v24 = vadd.f32 0.5, %v721_v23 }
 0xecc   :  { %v724_v18 = vmul.f32 %v1112_v17, %v720_v2  ;;  %v723_v19 = vmul.f32 %v720_v2, %v658_v10 }
 0xece   :  { %726 = vrot.lane.b32.xlu1 %v724_v18, %s1316_s2 }
 0xf40   :  { %v727_v21 = vpop.permute.xlu1 %726 }
 0xf41   :  { %v1592_v22 = vadd.f32 %v727_v21, %v723_v19 }
 0xf43   :  { %1113 = vtanh.f32 %v1592_v22 }
 0xf4d   :  { %v1114_v25 = vpop.eup %1113 }
 0xf4e   :  { %v731_v26 = vmul.f32 %v1114_v25, %v722_v24 }
 0xf50   :  { %v740_v27 = vpack.c.bf16 %v731_v26, %v731_v26 }
 0xf52   :  { %742 = vrot.lane.b32.xlu0 %v740_v27, %s1316_s2 }
 0xf56   :  { %307 = vrot.lane.b32.xlu0 %v1507_v1, %s1319_s26 }
 0xf5a   :  { %449 = vrot.lane.b32.xlu0 %v1539_v53, %s1319_s26 }
 0xf5e   :  { %591 = vrot.lane.b32.xlu0 %v1570_v43, %s1319_s26  ;;  %v1065_v43 = vld [vmem:[#allocation11] sm:$0xff]  }
 0xf5f   :  { %1025 = vmatprep.subr.bf16.mxu1 %v1065_v43 }
 0xf60   :  { %1026 = vmatpush3.bf16.msra.mxu1 %v1065_v43 }
 0xf61   :  { %1027 = vmatprep.subr.bf16.mxu1 %v1066_v47 }
 0xf62   :  { %733 = vrot.lane.b32.xlu0 %v731_v26, %s1319_s26 }
 0xf64   :  { %1028 = vmatpush3.bf16.msra.mxu1 %v1066_v47 }
 0xf66   :  { %808 = vrot.lane.b32.xlu0 %v731_v26, %s1316_s2 }
 0xfc4   :  { %v743_v28 = vpop.permute.xlu0 %742 }
 0xfc5   :  { %1011 = vmatmul.mubr.msk.bf16.vlgmr.msra.gmra.mrb[16].mxu0 %vm165_vm1, %v743_v28 }
 0xfc8   :  { %v308_v29 = vpop.permute.xlu0 %307 }
 0xfc9   :  { %310 = vst.msk [vmem:[#allocation2] sm:$0xff] %vm114_vm0, %v308_v29 }
 0xfcc   :  { %v450_v30 = vpop.permute.xlu0 %449 }
 0xfcd   :  { %452 = vst.msk [vmem:[#allocation2 + $0x10] sm:$0xff] %vm114_vm0, %v450_v30 }
 0xfd0   :  { %v592_v1 = vpop.permute.xlu0 %591  ;;  %v825_v4 = vld [vmem:[#allocation2] sm:$0xff] }
 0xfd1   :  { %594 = vst.msk [vmem:[#allocation2 + $0x20] sm:$0xff] %vm114_vm0, %v592_v1 }
 0xfd4   :  { %v734_v53 = vpop.permute.xlu0 %733  ;;  %v827_v8 = vld [vmem:[#allocation2 + $0x10] sm:$0xff] }
 0xfd5   :  { %736 = vst.msk [vmem:[#allocation2 + $0x30] sm:$0xff] %vm114_vm0, %v734_v53 }
 0xfd8   :  { %v809_v32 = vpop.permute.xlu0 %808  ;;  %v829_v55 = vld [vmem:[#allocation2 + $0x20] sm:$0xff] }
 0xfd9   :  { %811 = vst.msk [vmem:[#allocation13] sm:$0xff] %vm114_vm0, %v809_v32 }
 0xfdc   :  { %v831_v61 = vld [vmem:[#allocation2 + $0x30] sm:$0xff] }
0x1098   :  { %v781_v34 = vpop.f32.mrb[16].mxu0 }
0x1099   :  { %v782_v36 = vadd.f32 %v781_v34, %v738_v33  ;;  %v783_v37 = vpop.f32.mrb[17].mxu0 }
0x109a   :  { %v785_v38 = vpop.f32.mrb[18].mxu0  ;;  %v784_v39 = vadd.f32 %v783_v37, %v739_v35 }
0x109b   :  { %1115 = vtanh.f32 %v782_v36  ;;  %v786_v40 = vpop.f32.mrb[19].mxu0 }
0x109c   :  { %1117 = vtanh.f32 %v784_v39 }
0x10a5   :  { %v1116_v41 = vpop.eup %1115 }
0x10a6   :  { %v790_v42 = vmul.f32 0.5, %v1116_v41  ;;  %v1118_v45 = vpop.eup %1117 }
0x10a7   :  { %v792_v51 = vmul.f32 0.5, %v1118_v45 }
0x10a8   :  { %v791_v44 = vadd.f32 0.5, %v790_v42 }
0x10a9   :  { %v793_v5 = vadd.f32 0.5, %v792_v51 }
0x10aa   :  { %v795_v46 = vmul.f32 %v1118_v45, %v791_v44  ;;  %v794_v48 = vmul.f32 %v791_v44, %v1592_v22 }
0x10ac   :  { %797 = vrot.lane.b32.xlu1 %v795_v46, %s1316_s2 }
0x10b0   :  { %378 = vrot.lane.b32.xlu1 %v1523_v31, %s1319_s26 }
0x10b4   :  { %520 = vrot.lane.b32.xlu1 %v1555_v20, %s1319_s26 }
0x10b8   :  { %662 = vrot.lane.b32.xlu1 %v1585_v58, %s1319_s26 }
0x111e   :  { %v798_v49 = vpop.permute.xlu1 %797 }
0x111f   :  { %v800_v50 = vadd.f32 %v798_v49, %v794_v48 }
0x1121   :  { %1119 = vtanh.f32 %v800_v50  ;;  %820 = vrot.lane.b32.xlu0 %v800_v50, %s1319_s26 }
0x1122   :  { %v379_v3 = vpop.permute.xlu1 %378 }
0x1123   :  { %381 = vst.msk [vmem:[#allocation2 + $0x8] sm:$0xff] %vm114_vm0, %v379_v3 }
0x1126   :  { %v521_v0 = vpop.permute.xlu1 %520 }
0x1127   :  { %523 = vst.msk [vmem:[#allocation2 + $0x18] sm:$0xff] %vm114_vm0, %v521_v0 }
0x112a   :  { %v663_v31 = vpop.permute.xlu1 %662  ;;  %v826_v20 = vld [vmem:[#allocation2 + $0x8] sm:$0xff] }
0x112b   :  { %v1120_v52 = vpop.eup %1119  ;;  %665 = vst.msk [vmem:[#allocation2 + $0x28] sm:$0xff] %vm114_vm0, %v663_v31  ;;  %v833_v6 = vpack.c.bf16 %v826_v20, %v825_v4 }
0x112c   :  { %v802_v54 = vmul.f32 %v1120_v52, %v793_v5 }
0x112d   :  { %1029 = vmatprep.mubr.msk.bf16.mxu1 %vm114_vm0, %v833_v6 }
0x112e   :  { %804 = vrot.lane.b32.xlu1 %v802_v54, %s1319_s26  ;;  %v828_v9 = vld [vmem:[#allocation2 + $0x18] sm:$0xff] }
0x112f   :  { %v834_v10 = vpack.c.bf16 %v828_v9, %v827_v8 }
0x1131   :  { %1030 = vmatmul.mubr.msk.bf16.vlgmr.msra.gmra.mrb[16].mxu1 %vm114_vm0, %v834_v10 }
0x1132   :  { %815 = vrot.lane.b32.xlu1 %v1592_v22, %s1316_s2  ;;  %v830_v56 = vld [vmem:[#allocation2 + $0x28] sm:$0xff] }
0x1133   :  { %v835_v57 = vpack.c.bf16 %v830_v56, %v829_v55 }
0x1135   :  { %1033 = vmatprep.mubr.msk.bf16.mxu1 %vm114_vm0, %v835_v57 }
0x1193   :  { %v821_v58 = vpop.permute.xlu0 %820 }
0x1194   :  { %824 = vst.msk [vmem:[#allocation15 + $0x8] sm:$0xff] %vm114_vm0, %v821_v58 }
0x11a0   :  { %v805_v59 = vpop.permute.xlu1 %804 }
0x11a1   :  { %807 = vst.msk [vmem:[#allocation2 + $0x38] sm:$0xff] %vm114_vm0, %v805_v59  ;;  %813 = vst.msk [vmem:[#allocation13 + $0x8] sm:$0xff] %vm114_vm0, %v805_v59 }
0x11a4   :  { %v816_v60 = vpop.permute.xlu1 %815 }
0x11a5   :  { %818 = vst.msk [vmem:[#allocation15] sm:$0xff] %vm114_vm0, %v816_v60 }
0x11a8   :  { %v832_v62 = vld [vmem:[#allocation2 + $0x38] sm:$0xff] }
0x11a9   :  { %v836_v63 = vpack.c.bf16 %v832_v62, %v831_v61 }
0x11ab   :  { %1034 = vmatmul.mubr.msk.bf16.gmra.mrb[20].mxu1 %vm114_vm0, %v836_v63 }
0x1204   :  { %v1031_v11 = vpop.f32.mrb[16].mxu1 }
0x1205   :  { %1242 = shalt.err (!%p1239_p2)
}
0x1206   :  { %s1243_s10 = scalar_lea.hbm %s1688_s7, 256 }
0x1207   :  { %p1244_p3 = scmp.ne.s32.totalorder %s1688_s7, %s1243_s10  ;;  %p1247_p4 = scmp.lt.u32.totalorder %s1243_s10, %s1688_s7 }
0x1209   :  { %p1249_p5 = pnand %p1247_p4, %p1244_p3 }
0x120b   :  { %1252 = shalt.err (!%p1249_p5)
}
0x120c   :  { %968 = dma.vmem_to_hbm [thread:$0]  %s963_s30, 256, %s1688_s7, [#allocation14], %s1308_s15, %s1308_s15, %s1309_s16   ;;  %v915_v12 = vadd.f32 %v1031_v11, %v1012_v7  ;;  %v906_v13 = vpop.f32.mrb[17].mxu1 }
0x120d   :  { %v907_v14 = vadd.f32 %v1012_v7, %v906_v13  ;;  %v1032_v15 = vpop.f32.mrb[18].mxu1  ;;  %s1321_s14 = smov [#allocation15]  }
0x120e   :  { %s974_s17 = sshll.u32 %s1321_s14, 4  ;;  %939 = vst [vmem:[#allocation12 + $0x10] sm:$0xff] %v915_v12  ;;  %v918_v16 = vadd.f32 %v1032_v15, %v1012_v7  ;;  %v909_v2 = vpop.f32.mrb[19].mxu1  ;;  %s975_s17 = int_to_ptr.vmem [resolvable:$true] %s974_s17 }
0x120f   :  { %937 = vst [vmem:[#allocation12] sm:$0xff] %v907_v14  ;;  %v910_v17 = vadd.f32 %v1012_v7, %v909_v2  ;;  %s1253_s18 = scalar_lea.vmem %s975_s17, 256  ;;  %p1258_p7 = scmp.lt.s32.totalorder %s975_s17, %s975_s17 }
0x1210   :  { %p1254_p6 = scmp.ne.s32.totalorder %s975_s17, %s1253_s18  ;;  %p1259_p8 = scmp.lt.s32.totalorder %s1253_s18, %s1253_s18 }
0x1212   :  { %p1260_p9 = por %p1259_p8, %p1258_p7 }
0x1214   :  { %p1261_p10 = pnand %p1260_p9, %p1254_p6 }
0x1216   :  { %1264 = shalt.err (!%p1261_p10)
}
0x1217   :  { %s1265_s3 = scalar_lea.hbm %s1689_s8, 256 }
0x1218   :  { %p1266_p11 = scmp.ne.s32.totalorder %s1689_s8, %s1265_s3  ;;  %p1269_p12 = scmp.lt.u32.totalorder %s1265_s3, %s1689_s8 }
0x121a   :  { %p1271_p13 = pnand %p1269_p12, %p1266_p11 }
0x121c   :  { %1274 = shalt.err (!%p1271_p13)
}
0x121d   :  { %980 = dma.vmem_to_hbm [thread:$0]  %s975_s17, 256, %s1689_s8, [#allocation14], %s1308_s15, %s1308_s15, %s1309_s16   ;;  %940 = vst [vmem:[#allocation12 + $0x18] sm:$0xff] %v918_v16  ;;  %938 = vst [vmem:[#allocation12 + $0x8] sm:$0xff] %v910_v17 }
0x121e   :  { %s1322_s26 = smov [#allocation12]  }
0x121f   :  { %s950_s4 = sshll.u32 %s1322_s26, 4  ;;  %s951_s4 = int_to_ptr.vmem [resolvable:$true] %s950_s4 }
0x1220   :  { %s1275_s27 = scalar_lea.vmem %s951_s4, 1024  ;;  %p1280_p1 = scmp.lt.s32.totalorder %s951_s4, %s951_s4 }
0x1221   :  { %p1276_p0 = scmp.ne.s32.totalorder %s951_s4, %s1275_s27  ;;  %p1281_p2 = scmp.lt.s32.totalorder %s1275_s27, %s1275_s27 }
0x1223   :  { %p1282_p3 = por %p1281_p2, %p1280_p1 }
0x1225   :  { %p1283_p4 = pnand %p1282_p3, %p1276_p0 }
0x127e   :  { %v1035_v18 = vpop.f32.mrb[20].mxu1 }
0x127f   :  { %v931_v19 = vadd.f32 %v1035_v18, %v1012_v7  ;;  %v922_v21 = vpop.f32.mrb[21].mxu1 }
0x1280   :  { %v923_v22 = vadd.f32 %v1012_v7, %v922_v21  ;;  %v1036_v23 = vpop.f32.mrb[22].mxu1 }
0x1281   :  { %943 = vst [vmem:[#allocation12 + $0x30] sm:$0xff] %v931_v19  ;;  %v934_v24 = vadd.f32 %v1036_v23, %v1012_v7  ;;  %v925_v25 = vpop.f32.mrb[23].mxu1 }
0x1282   :  { %941 = vst [vmem:[#allocation12 + $0x20] sm:$0xff] %v923_v22  ;;  %v926_v26 = vadd.f32 %v1012_v7, %v925_v25 }
0x1283   :  { %944 = vst [vmem:[#allocation12 + $0x38] sm:$0xff] %v934_v24 }
0x1284   :  { %942 = vst [vmem:[#allocation12 + $0x28] sm:$0xff] %v926_v26 }
0x1285   :  { %1286 = shalt.err (!%p1283_p4)
}
0x1286   :  { %s1287_s30 = scalar_lea.hbm %s1687_s6, 1024 }
0x1287   :  { %p1288_p5 = scmp.ne.s32.totalorder %s1687_s6, %s1287_s30  ;;  %p1291_p6 = scmp.lt.u32.totalorder %s1287_s30, %s1687_s6 }
0x1289   :  { %p1293_p7 = pnand %p1291_p6, %p1288_p5 }
0x128b   :  { %1296 = shalt.err (!%p1293_p7)
}
0x128c   :  { %956 = dma.vmem_to_hbm [thread:$0]  %s951_s4, 1024, %s1687_s6, [#allocation5], %s1308_s15, %s1308_s15, %s1309_s16  }
0x128d   :  { %1303 = dma.done.wait [#allocation5], 1024  }
0x128e   :  { %1304 = vsyncadd [#allocation5], 4294966272 }
0x128f   :  { %1305 = dma.done.wait [#allocation14], 512  }
0x1290   :  { %1306 = vsyncadd [#allocation14], 4294966784 }
0x1291   :  { %990 = vsyncpa [#allocation4], 1 }
0x1292   :  { %991 = vsyncpa [#allocation7], 1 }
0x1293   :  { %992 = vsyncpa [#allocation10], 1 }
0x1294   :  { %993 = vsyncpa [#allocation5], 1 }
0x1295   :  { %994 = vsyncpa [#allocation14], 1 }

</bundles_post_ra>
